<compile_context>
chip_gen: v6e
topology: v6e:2x2x1
jax: 0.10.0
libtpu: 0.0.40
codegen_flags: <defaults>
</compile_context>

<pallas_src>
import jax
import jax.numpy as jnp
from jax.experimental import pallas as pl
from jax.experimental.pallas import tpu as pltpu


# ----------------------------------------------------------------------------------
# Kernel 1: hoisted input projection + serial LSTM recurrence (single invocation)
# ----------------------------------------------------------------------------------
def _lstm_recurrence_kernel(x_ref, wih_ref, whh_ref, b_ref, h_out_ref, gx_ref):
    """x_ref:     (T*B, E)   bf16  time-major flattened LSTM inputs
    wih_ref:   (E, 4H)    bf16  W_ih^T, gate-column order (i, f, o, g)
    whh_ref:   (H, 4H)    bf16  W_hh^T, gate-column order (i, f, o, g)
    b_ref:     (1, 4H)    f32   b_ih + b_hh, gate order (i, f, o, g)
    h_out_ref: (B, T, H)  f32   all hidden states, written batch-major
    gx_ref:    (T*B, 4H)  f32   scratch: hoisted input-projection gates
    """
    H = whh_ref.shape[0]
    B, T, _ = h_out_ref.shape

    # Phase 1: hoisted input projection — one MXU-efficient matmul over all T*B rows.
    gx_ref[...] = (
        jnp.dot(x_ref[...], wih_ref[...], preferred_element_type=jnp.float32)
        + b_ref[...])

    # Phase 2: serial recurrence — only h @ W_hh^T sits on the critical path.
    whh = whh_ref[...]                                    # bf16, resident across loop
    h = jnp.zeros((B, H), jnp.float32)
    c = jnp.zeros((B, H), jnp.float32)
    for t in range(T):                                    # T small & static: full unroll
        gates = gx_ref[t * B:(t + 1) * B, :] + jnp.dot(
            h.astype(jnp.bfloat16), whh, preferred_element_type=jnp.float32)
        # Gate columns pre-permuted to (i, f, o, g): one contiguous sigmoid pass
        # over (B, 3H) + one tanh pass over (B, H); math stays f32 (v5e-safe).
        sig = jax.nn.sigmoid(gates[:, :3 * H])
        i_g = sig[:, 0 * H:1 * H]
        f_g = sig[:, 1 * H:2 * H]
        o_g = sig[:, 2 * H:3 * H]
        g_g = jnp.tanh(gates[:, 3 * H:])
        c = f_g * c + i_g * g_g
        h = o_g * jnp.tanh(c)
        h_out_ref[:, t, :] = h        # batch-major store; off the serial data chain


# ----------------------------------------------------------------------------------
# Kernel 2: deferred vocab projection — V-tiled parallel grid, batch-major output
# ----------------------------------------------------------------------------------
def _vocab_projection_kernel(h_ref, wlin_ref, blin_ref, out_ref):
    """h_ref:    (B, T, H)   f32   all hidden states (batch-major)
    wlin_ref: (H, TV)     bf16  one vocab tile of W_lin^T
    blin_ref: (1, TV)     f32
    out_ref:  (B, T, TV)  f32   one vocab tile of the scores, batch-major
    """
    B, T, H = h_ref.shape
    h_flat = h_ref[...].reshape(B * T, H).astype(jnp.bfloat16)   # major-dim merge: free
    scores = (jnp.dot(h_flat, wlin_ref[...], preferred_element_type=jnp.float32)
              + blin_ref[...])
    out_ref[...] = scores.reshape(B, T, -1)                      # major-dim split: free


# ----------------------------------------------------------------------------------
# Wrapper
# ----------------------------------------------------------------------------------
def lstm_decoder_pallas(x_tbe, w_ih_t, w_hh_t, b_gates, w_lin_t, b_lin,
                        *, vocab_tile=None):
    """x_tbe: (T, B, E) time-major LSTM inputs (any float dtype; cast to bf16 here).
    Weights in PyTorch gate order (i, f, g, o), pre-transposed:
      w_ih_t (E, 4H), w_hh_t (H, 4H), b_gates (1, 4H), w_lin_t (H, V), b_lin (1, V).
    Returns (B, T, V) float32 scores, batch-major (no wrapper transpose).
    """
    T, B, E = x_tbe.shape
    H = w_hh_t.shape[0]
    V = w_lin_t.shape[1]

    # Lane/sublane alignment assumptions (review: assert instead of silently degrading).
    assert E % 128 == 0 and H % 128 == 0, "E and H must be multiples of 128"
    assert B % 8 == 0, "B must be a multiple of 8"
    if vocab_tile is None:
        vocab_tile = min(V, 512)
    assert vocab_tile % 128 == 0 and V % vocab_tile == 0, "bad vocab tile"

    def _permute_gates(w):
        # columns (i | f | g | o) -> (i | f | o | g), each block width H
        return jnp.concatenate([w[:, :2 * H], w[:, 3 * H:], w[:, 2 * H:3 * H]], axis=1)

    # bf16 MXU operands: cast/permute weights once (halves weight HBM/VMEM traffic).
    w_ih_bf = _permute_gates(w_ih_t).astype(jnp.bfloat16)
    w_hh_bf = _permute_gates(w_hh_t).astype(jnp.bfloat16)
    b_perm = _permute_gates(b_gates).astype(jnp.float32)
    w_lin_bf = w_lin_t.astype(jnp.bfloat16)

    # bf16 inputs, flattened 2-D time-major (free: already contiguous).
    x_flat = x_tbe.astype(jnp.bfloat16).reshape(T * B, E)

    # --- Kernel 1: recurrence (grid=(1,), everything resident) ---------------------
    k1_bytes = (2 * (T * B * E * 2 + E * 4 * H * 2 + H * 4 * H * 2
                     + 4 * H * 4 + B * T * H * 4)       # 2x-buffered in/out
                + T * B * 4 * H * 4)                    # gx scratch
    h_all = pl.pallas_call(
        _lstm_recurrence_kernel,
        out_shape=jax.ShapeDtypeStruct((B, T, H), jnp.float32),
        grid_spec=pltpu.PrefetchScalarGridSpec(
            num_scalar_prefetch=0,
            grid=(1,),                      # single invocation: no per-step grid overhead
            in_specs=[
                pl.BlockSpec((T * B, E), lambda i: (0, 0)),      # x (whole sequence)
                pl.BlockSpec((E, 4 * H), lambda i: (0, 0)),      # W_ih^T
                pl.BlockSpec((H, 4 * H), lambda i: (0, 0)),      # W_hh^T
                pl.BlockSpec((1, 4 * H), lambda i: (0, 0)),      # b_ih + b_hh
            ],
            out_specs=pl.BlockSpec((B, T, H), lambda i: (0, 0, 0)),
            scratch_shapes=[pltpu.VMEM((T * B, 4 * H), jnp.float32)],
        ),
        compiler_params=pltpu.CompilerParams(
            dimension_semantics=("arbitrary",),          # sequential recurrence inside
            vmem_limit_bytes=int(min(max(4 * k1_bytes, 16 << 20), 100 << 20))),
    )(x_flat, w_ih_bf, w_hh_bf, b_perm)

    # --- Kernel 2: vocab projection (parallel V-tiled grid, batch-major output) ----
    k2_bytes = 2 * (B * T * H * 4 + H * vocab_tile * 2 + vocab_tile * 4
                    + B * T * vocab_tile * 4)
    scores = pl.pallas_call(
        _vocab_projection_kernel,
        out_shape=jax.ShapeDtypeStruct((B, T, V), jnp.float32),
        grid_spec=pltpu.PrefetchScalarGridSpec(
            num_scalar_prefetch=0,
            grid=(V // vocab_tile,),
            in_specs=[
                pl.BlockSpec((B, T, H), lambda v: (0, 0, 0)),          # all hiddens
                pl.BlockSpec((H, vocab_tile), lambda v: (0, v)),       # W_lin^T tile
                pl.BlockSpec((1, vocab_tile), lambda v: (0, v)),       # b_lin tile
            ],
            out_specs=pl.BlockSpec((B, T, vocab_tile), lambda v: (0, 0, v)),
        ),
        compiler_params=pltpu.CompilerParams(
            dimension_semantics=("parallel",),
            vmem_limit_bytes=int(min(max(4 * k2_bytes, 16 << 20), 100 << 20))),
    )(h_all, w_lin_bf, b_lin.astype(jnp.float32))

    return scores                                     # (B, T, V) batch-major


def decoder_rnn_forward(params, features, captions):
    """Mirrors DecoderRNN.forward(features, captions).

    features: (B, embed_size) float32
    captions: (B, L) int32
    returns:  (B, L, vocab_size) float32   (seq len T = 1 + (L-1) = L)
    """
    embeds = jnp.take(params["embed"], captions[:, :-1], axis=0)            # (B, L-1, E)
    lstm_inputs = jnp.concatenate([features[:, None, :], embeds], axis=1)   # (B, T, E)
    x_tbe = jnp.transpose(lstm_inputs, (1, 0, 2))                           # (T, B, E)
    return lstm_decoder_pallas(
        x_tbe,
        params["w_ih_t"], params["w_hh_t"], params["b_gates"],
        params["w_lin_t"], params["b_lin"])                                 # (B, T, V)


# ----------------------------------------------------------------------------------
# Pure-JAX reference (lax.scan, same bf16-MXU-operand numerics, original gate order)
# ----------------------------------------------------------------------------------
def _reference_forward(params, features, captions):
    embeds = jnp.take(params["embed"], captions[:, :-1], axis=0)
    x = jnp.concatenate([features[:, None, :], embeds], axis=1)             # (B, T, E)
    x = jnp.transpose(x, (1, 0, 2))                                         # (T, B, E)
    B = x.shape[1]
    H = params["w_hh_t"].shape[0]
    w_ih = params["w_ih_t"].astype(jnp.bfloat16)
    w_hh = params["w_hh_t"].astype(jnp.bfloat16)
    w_lin = params["w_lin_t"].astype(jnp.bfloat16)

    def step(carry, x_t):
        h, c = carry
        gates = (jnp.dot(x_t.astype(jnp.bfloat16), w_ih,
                         preferred_element_type=jnp.float32)
                 + params["b_gates"][0]
                 + jnp.dot(h.astype(jnp.bfloat16), w_hh,
                           preferred_element_type=jnp.float32))
        i = jax.nn.sigmoid(gates[:, 0 * H:1 * H])
        f = jax.nn.sigmoid(gates[:, 1 * H:2 * H])
        g = jnp.tanh(gates[:, 2 * H:3 * H])
        o = jax.nn.sigmoid(gates[:, 3 * H:4 * H])
        c = f * c + i * g
        h = o * jnp.tanh(c)
        out = (jnp.dot(h.astype(jnp.bfloat16), w_lin,
                       preferred_element_type=jnp.float32)
               + params["b_lin"][0])
        return (h, c), out

    init = (jnp.zeros((B, H), jnp.float32), jnp.zeros((B, H), jnp.float32))
    _, outs = jax.lax.scan(step, init, x)                                   # (T, B, V)
    return jnp.transpose(outs, (1, 0, 2))


if __name__ == "__main__":
    # Small but tile-friendly sizes: E, H multiples of 128 -> lane-aligned gate slices;
    # V = 1024 with the default 512-lane vocab tile -> a 2-step parallel V grid.
    batch = 8
    embed_size = 128
    hidden_size = 128
    vocab_size = 1024
    cap_len = 8            # -> LSTM seq length T = 1 + (cap_len - 1) = 8

    key = jax.random.PRNGKey(0)
    ks = jax.random.split(key, 9)

    # Deterministic synthetic parameters (PyTorch shapes, stored pre-transposed:
    # W_ih (4H,E)->W_ih^T, W_hh (4H,H)->W_hh^T, lin weight (V,H)->W_lin^T), gate order
    # (i,f,g,o). Dropout(0.2) inside nn.LSTM is a no-op for num_layers=1, so omitted.
    params = {
        "embed":   0.1 * jax.random.normal(ks[0], (vocab_size, embed_size), jnp.float32),
        "w_ih_t":  0.1 * jax.random.normal(ks[1], (embed_size, 4 * hidden_size), jnp.float32),
        "w_hh_t":  0.1 * jax.random.normal(ks[2], (hidden_size, 4 * hidden_size), jnp.float32),
        "b_gates": (0.1 * jax.random.normal(ks[3], (1, 4 * hidden_size), jnp.float32)
                    + 0.1 * jax.random.normal(ks[4], (1, 4 * hidden_size), jnp.float32)),
        "w_lin_t": 0.1 * jax.random.normal(ks[5], (hidden_size, vocab_size), jnp.float32),
        "b_lin":   0.1 * jax.random.normal(ks[6], (1, vocab_size), jnp.float32),
    }

    features = jax.random.normal(ks[7], (batch, embed_size), jnp.float32)
    captions = jax.random.randint(ks[8], (batch, cap_len), 0, vocab_size, dtype=jnp.int32)

    scores = decoder_rnn_forward(params, features, captions)
    scores = jax.block_until_ready(scores)

    ref = jax.block_until_ready(_reference_forward(params, features, captions))
    assert scores.shape == (batch, cap_len, vocab_size), scores.shape
    assert jnp.allclose(scores, ref, atol=1e-2, rtol=1e-2), \
        f"max abs err {jnp.max(jnp.abs(scores - ref))}"

    print("KERNEL_OK")
</pallas_src>

<mosaic_0001>
module attributes {stable_mosaic.version = 11 : i64} {
  func.func @_lstm_recurrence_kernel(%arg0: i32, %arg1: memref<64x128xbf16, #tpu.memory_space<vmem>>, %arg2: memref<128x512xbf16, #tpu.memory_space<vmem>>, %arg3: memref<128x512xbf16, #tpu.memory_space<vmem>>, %arg4: memref<1x512xf32, #tpu.memory_space<vmem>>, %arg5: memref<8x8x128xf32, #tpu.memory_space<vmem>>, %arg6: memref<64x512xf32, #tpu.memory_space<vmem>>) attributes {dimension_semantics = [#tpu.dimension_semantics<arbitrary>], iteration_bounds = array<i64: 1>, scalar_prefetch = 0 : i64, scratch_operands = 1 : i64, tpu.core_type = #tpu.core_type<tc>, window_params = [{pipeline_mode = #tpu.pipeline_mode<synchronous>, transform_indices = @transform_0, window_bounds = array<i64: 64, 128>}, {pipeline_mode = #tpu.pipeline_mode<synchronous>, transform_indices = @transform_1, window_bounds = array<i64: 128, 512>}, {pipeline_mode = #tpu.pipeline_mode<synchronous>, transform_indices = @transform_2, window_bounds = array<i64: 128, 512>}, {pipeline_mode = #tpu.pipeline_mode<synchronous>, transform_indices = @transform_3, window_bounds = array<i64: 1, 512>}, {pipeline_mode = #tpu.pipeline_mode<synchronous>, transform_indices = @transform_4, window_bounds = array<i64: 8, 8, 128>}]} {
    %c0 = arith.constant 0 : index
    %c0_0 = arith.constant 0 : index
    %0 = vector.load %arg1[%c0, %c0_0] : memref<64x128xbf16, #tpu.memory_space<vmem>>, vector<64x128xbf16>
    %c0_1 = arith.constant 0 : index
    %c0_2 = arith.constant 0 : index
    %1 = vector.load %arg2[%c0_1, %c0_2] : memref<128x512xbf16, #tpu.memory_space<vmem>>, vector<128x512xbf16>
    %cst = arith.constant dense<0.000000e+00> : vector<64x512xf32>
    %2 = tpu.matmul %0, %1, %cst {dimension_numbers = #tpu.dot_dimension_numbers<[1], [0], [0], [1], [0, 0, 1, 1], [], []>} : vector<64x128xbf16>, vector<128x512xbf16>, vector<64x512xf32> -> vector<64x512xf32>
    %c0_3 = arith.constant 0 : index
    %c0_4 = arith.constant 0 : index
    %3 = vector.load %arg4[%c0_3, %c0_4] : memref<1x512xf32, #tpu.memory_space<vmem>>, vector<1x512xf32>
    %4 = vector.broadcast %3 : vector<1x512xf32> to vector<64x512xf32>
    %5 = arith.addf %2, %4 : vector<64x512xf32>
    %c0_5 = arith.constant 0 : index
    %c0_6 = arith.constant 0 : index
    %6 = vector.load %arg6[%c0_5, %c0_6] : memref<64x512xf32, #tpu.memory_space<vmem>>, vector<64x512xf32>
    tpu.vector_store %arg6[%c0_5, %c0_6], %5 {strides = array<i32>} : memref<64x512xf32, #tpu.memory_space<vmem>>, vector<64x512xf32>,
    %c0_7 = arith.constant 0 : index
    %c0_8 = arith.constant 0 : index
    %7 = vector.load %arg3[%c0_7, %c0_8] : memref<128x512xbf16, #tpu.memory_space<vmem>>, vector<128x512xbf16>
    %cst_9 = arith.constant 0.000000e+00 : f32
    %8 = vector.broadcast %cst_9 : f32 to vector<8x128xf32>
    %cst_10 = arith.constant 0.000000e+00 : f32
    %9 = vector.broadcast %cst_10 : f32 to vector<8x128xf32>
    %c0_11 = arith.constant 0 : index
    %c0_12 = arith.constant 0 : index
    %10 = vector.load %arg6[%c0_11, %c0_12] : memref<64x512xf32, #tpu.memory_space<vmem>>, vector<8x512xf32>
    %11 = arith.truncf %8 : vector<8x128xf32> to vector<8x128xbf16>
    %cst_13 = arith.constant dense<0.000000e+00> : vector<8x512xf32>
    %12 = tpu.matmul %11, %7, %cst_13 {dimension_numbers = #tpu.dot_dimension_numbers<[1], [0], [0], [1], [0, 0, 1, 1], [], []>} : vector<8x128xbf16>, vector<128x512xbf16>, vector<8x512xf32> -> vector<8x512xf32>
    %13 = arith.addf %10, %12 : vector<8x512xf32>
    %14 = vector.extract_strided_slice %13 {offsets = [0, 0], sizes = [8, 384], strides = [1, 1]} : vector<8x512xf32> to vector<8x384xf32>
    %15 = arith.negf %14 : vector<8x384xf32>
    %16 = math.exp %15 : vector<8x384xf32>
    %cst_14 = arith.constant 1.000000e+00 : f32
    %17 = vector.broadcast %cst_14 : f32 to vector<8x384xf32>
    %18 = arith.addf %17, %16 : vector<8x384xf32>
    %19 = arith.divf %17, %18 : vector<8x384xf32>
    %20 = vector.extract_strided_slice %19 {offsets = [0, 0], sizes = [8, 128], strides = [1, 1]} : vector<8x384xf32> to vector<8x128xf32>
    %21 = vector.extract_strided_slice %19 {offsets = [0, 128], sizes = [8, 128], strides = [1, 1]} : vector<8x384xf32> to vector<8x128xf32>
    %22 = vector.extract_strided_slice %19 {offsets = [0, 256], sizes = [8, 128], strides = [1, 1]} : vector<8x384xf32> to vector<8x128xf32>
    %23 = vector.extract_strided_slice %13 {offsets = [0, 384], sizes = [8, 128], strides = [1, 1]} : vector<8x512xf32> to vector<8x128xf32>
    %24 = math.tanh %23 : vector<8x128xf32>
    %25 = arith.mulf %21, %9 : vector<8x128xf32>
    %26 = arith.mulf %20, %24 : vector<8x128xf32>
    %27 = arith.addf %25, %26 : vector<8x128xf32>
    %28 = math.tanh %27 : vector<8x128xf32>
    %29 = arith.mulf %22, %28 : vector<8x128xf32>
    %c0_15 = arith.constant 0 : index
    %c0_16 = arith.constant 0 : index
    %c0_17 = arith.constant 0 : index
    %30 = vector.load %arg5[%c0_15, %c0_16, %c0_17] : memref<8x8x128xf32, #tpu.memory_space<vmem>>, vector<8x1x128xf32>
    %31 = vector.shape_cast %30 : vector<8x1x128xf32> to vector<8x128xf32>
    %32 = vector.shape_cast %29 : vector<8x128xf32> to vector<8x1x128xf32>
    tpu.vector_store %arg5[%c0_15, %c0_16, %c0_17], %32 {strides = array<i32>} : memref<8x8x128xf32, #tpu.memory_space<vmem>>, vector<8x1x128xf32>,
    %c8 = arith.constant 8 : index
    %c0_18 = arith.constant 0 : index
    %33 = vector.load %arg6[%c8, %c0_18] : memref<64x512xf32, #tpu.memory_space<vmem>>, vector<8x512xf32>
    %34 = arith.truncf %29 : vector<8x128xf32> to vector<8x128xbf16>
    %cst_19 = arith.constant dense<0.000000e+00> : vector<8x512xf32>
    %35 = tpu.matmul %34, %7, %cst_19 {dimension_numbers = #tpu.dot_dimension_numbers<[1], [0], [0], [1], [0, 0, 1, 1], [], []>} : vector<8x128xbf16>, vector<128x512xbf16>, vector<8x512xf32> -> vector<8x512xf32>
    %36 = arith.addf %33, %35 : vector<8x512xf32>
    %37 = vector.extract_strided_slice %36 {offsets = [0, 0], sizes = [8, 384], strides = [1, 1]} : vector<8x512xf32> to vector<8x384xf32>
    %38 = arith.negf %37 : vector<8x384xf32>
    %39 = math.exp %38 : vector<8x384xf32>
    %cst_20 = arith.constant 1.000000e+00 : f32
    %40 = vector.broadcast %cst_20 : f32 to vector<8x384xf32>
    %41 = arith.addf %40, %39 : vector<8x384xf32>
    %42 = arith.divf %40, %41 : vector<8x384xf32>
    %43 = vector.extract_strided_slice %42 {offsets = [0, 0], sizes = [8, 128], strides = [1, 1]} : vector<8x384xf32> to vector<8x128xf32>
    %44 = vector.extract_strided_slice %42 {offsets = [0, 128], sizes = [8, 128], strides = [1, 1]} : vector<8x384xf32> to vector<8x128xf32>
    %45 = vector.extract_strided_slice %42 {offsets = [0, 256], sizes = [8, 128], strides = [1, 1]} : vector<8x384xf32> to vector<8x128xf32>
    %46 = vector.extract_strided_slice %36 {offsets = [0, 384], sizes = [8, 128], strides = [1, 1]} : vector<8x512xf32> to vector<8x128xf32>
    %47 = math.tanh %46 : vector<8x128xf32>
    %48 = arith.mulf %44, %27 : vector<8x128xf32>
    %49 = arith.mulf %43, %47 : vector<8x128xf32>
    %50 = arith.addf %48, %49 : vector<8x128xf32>
    %51 = math.tanh %50 : vector<8x128xf32>
    %52 = arith.mulf %45, %51 : vector<8x128xf32>
    %c0_21 = arith.constant 0 : index
    %c1 = arith.constant 1 : index
    %c0_22 = arith.constant 0 : index
    %53 = vector.load %arg5[%c0_21, %c1, %c0_22] : memref<8x8x128xf32, #tpu.memory_space<vmem>>, vector<8x1x128xf32>
    %54 = vector.shape_cast %53 : vector<8x1x128xf32> to vector<8x128xf32>
    %55 = vector.shape_cast %52 : vector<8x128xf32> to vector<8x1x128xf32>
    tpu.vector_store %arg5[%c0_21, %c1, %c0_22], %55 {strides = array<i32>} : memref<8x8x128xf32, #tpu.memory_space<vmem>>, vector<8x1x128xf32>,
    %c16 = arith.constant 16 : index
    %c0_23 = arith.constant 0 : index
    %56 = vector.load %arg6[%c16, %c0_23] : memref<64x512xf32, #tpu.memory_space<vmem>>, vector<8x512xf32>
    %57 = arith.truncf %52 : vector<8x128xf32> to vector<8x128xbf16>
    %cst_24 = arith.constant dense<0.000000e+00> : vector<8x512xf32>
    %58 = tpu.matmul %57, %7, %cst_24 {dimension_numbers = #tpu.dot_dimension_numbers<[1], [0], [0], [1], [0, 0, 1, 1], [], []>} : vector<8x128xbf16>, vector<128x512xbf16>, vector<8x512xf32> -> vector<8x512xf32>
    %59 = arith.addf %56, %58 : vector<8x512xf32>
    %60 = vector.extract_strided_slice %59 {offsets = [0, 0], sizes = [8, 384], strides = [1, 1]} : vector<8x512xf32> to vector<8x384xf32>
    %61 = arith.negf %60 : vector<8x384xf32>
    %62 = math.exp %61 : vector<8x384xf32>
    %cst_25 = arith.constant 1.000000e+00 : f32
    %63 = vector.broadcast %cst_25 : f32 to vector<8x384xf32>
    %64 = arith.addf %63, %62 : vector<8x384xf32>
    %65 = arith.divf %63, %64 : vector<8x384xf32>
    %66 = vector.extract_strided_slice %65 {offsets = [0, 0], sizes = [8, 128], strides = [1, 1]} : vector<8x384xf32> to vector<8x128xf32>
    %67 = vector.extract_strided_slice %65 {offsets = [0, 128], sizes = [8, 128], strides = [1, 1]} : vector<8x384xf32> to vector<8x128xf32>
    %68 = vector.extract_strided_slice %65 {offsets = [0, 256], sizes = [8, 128], strides = [1, 1]} : vector<8x384xf32> to vector<8x128xf32>
    %69 = vector.extract_strided_slice %59 {offsets = [0, 384], sizes = [8, 128], strides = [1, 1]} : vector<8x512xf32> to vector<8x128xf32>
    %70 = math.tanh %69 : vector<8x128xf32>
    %71 = arith.mulf %67, %50 : vector<8x128xf32>
    %72 = arith.mulf %66, %70 : vector<8x128xf32>
    %73 = arith.addf %71, %72 : vector<8x128xf32>
    %74 = math.tanh %73 : vector<8x128xf32>
    %75 = arith.mulf %68, %74 : vector<8x128xf32>
    %c0_26 = arith.constant 0 : index
    %c2 = arith.constant 2 : index
    %c0_27 = arith.constant 0 : index
    %76 = vector.load %arg5[%c0_26, %c2, %c0_27] : memref<8x8x128xf32, #tpu.memory_space<vmem>>, vector<8x1x128xf32>
    %77 = vector.shape_cast %76 : vector<8x1x128xf32> to vector<8x128xf32>
    %78 = vector.shape_cast %75 : vector<8x128xf32> to vector<8x1x128xf32>
    tpu.vector_store %arg5[%c0_26, %c2, %c0_27], %78 {strides = array<i32>} : memref<8x8x128xf32, #tpu.memory_space<vmem>>, vector<8x1x128xf32>,
    %c24 = arith.constant 24 : index
    %c0_28 = arith.constant 0 : index
    %79 = vector.load %arg6[%c24, %c0_28] : memref<64x512xf32, #tpu.memory_space<vmem>>, vector<8x512xf32>
    %80 = arith.truncf %75 : vector<8x128xf32> to vector<8x128xbf16>
    %cst_29 = arith.constant dense<0.000000e+00> : vector<8x512xf32>
    %81 = tpu.matmul %80, %7, %cst_29 {dimension_numbers = #tpu.dot_dimension_numbers<[1], [0], [0], [1], [0, 0, 1, 1], [], []>} : vector<8x128xbf16>, vector<128x512xbf16>, vector<8x512xf32> -> vector<8x512xf32>
    %82 = arith.addf %79, %81 : vector<8x512xf32>
    %83 = vector.extract_strided_slice %82 {offsets = [0, 0], sizes = [8, 384], strides = [1, 1]} : vector<8x512xf32> to vector<8x384xf32>
    %84 = arith.negf %83 : vector<8x384xf32>
    %85 = math.exp %84 : vector<8x384xf32>
    %cst_30 = arith.constant 1.000000e+00 : f32
    %86 = vector.broadcast %cst_30 : f32 to vector<8x384xf32>
    %87 = arith.addf %86, %85 : vector<8x384xf32>
    %88 = arith.divf %86, %87 : vector<8x384xf32>
    %89 = vector.extract_strided_slice %88 {offsets = [0, 0], sizes = [8, 128], strides = [1, 1]} : vector<8x384xf32> to vector<8x128xf32>
    %90 = vector.extract_strided_slice %88 {offsets = [0, 128], sizes = [8, 128], strides = [1, 1]} : vector<8x384xf32> to vector<8x128xf32>
    %91 = vector.extract_strided_slice %88 {offsets = [0, 256], sizes = [8, 128], strides = [1, 1]} : vector<8x384xf32> to vector<8x128xf32>
    %92 = vector.extract_strided_slice %82 {offsets = [0, 384], sizes = [8, 128], strides = [1, 1]} : vector<8x512xf32> to vector<8x128xf32>
    %93 = math.tanh %92 : vector<8x128xf32>
    %94 = arith.mulf %90, %73 : vector<8x128xf32>
    %95 = arith.mulf %89, %93 : vector<8x128xf32>
    %96 = arith.addf %94, %95 : vector<8x128xf32>
    %97 = math.tanh %96 : vector<8x128xf32>
    %98 = arith.mulf %91, %97 : vector<8x128xf32>
    %c0_31 = arith.constant 0 : index
    %c3 = arith.constant 3 : index
    %c0_32 = arith.constant 0 : index
    %99 = vector.load %arg5[%c0_31, %c3, %c0_32] : memref<8x8x128xf32, #tpu.memory_space<vmem>>, vector<8x1x128xf32>
    %100 = vector.shape_cast %99 : vector<8x1x128xf32> to vector<8x128xf32>
    %101 = vector.shape_cast %98 : vector<8x128xf32> to vector<8x1x128xf32>
    tpu.vector_store %arg5[%c0_31, %c3, %c0_32], %101 {strides = array<i32>} : memref<8x8x128xf32, #tpu.memory_space<vmem>>, vector<8x1x128xf32>,
    %c32 = arith.constant 32 : index
    %c0_33 = arith.constant 0 : index
    %102 = vector.load %arg6[%c32, %c0_33] : memref<64x512xf32, #tpu.memory_space<vmem>>, vector<8x512xf32>
    %103 = arith.truncf %98 : vector<8x128xf32> to vector<8x128xbf16>
    %cst_34 = arith.constant dense<0.000000e+00> : vector<8x512xf32>
    %104 = tpu.matmul %103, %7, %cst_34 {dimension_numbers = #tpu.dot_dimension_numbers<[1], [0], [0], [1], [0, 0, 1, 1], [], []>} : vector<8x128xbf16>, vector<128x512xbf16>, vector<8x512xf32> -> vector<8x512xf32>
    %105 = arith.addf %102, %104 : vector<8x512xf32>
    %106 = vector.extract_strided_slice %105 {offsets = [0, 0], sizes = [8, 384], strides = [1, 1]} : vector<8x512xf32> to vector<8x384xf32>
    %107 = arith.negf %106 : vector<8x384xf32>
    %108 = math.exp %107 : vector<8x384xf32>
    %cst_35 = arith.constant 1.000000e+00 : f32
    %109 = vector.broadcast %cst_35 : f32 to vector<8x384xf32>
    %110 = arith.addf %109, %108 : vector<8x384xf32>
    %111 = arith.divf %109, %110 : vector<8x384xf32>
    %112 = vector.extract_strided_slice %111 {offsets = [0, 0], sizes = [8, 128], strides = [1, 1]} : vector<8x384xf32> to vector<8x128xf32>
    %113 = vector.extract_strided_slice %111 {offsets = [0, 128], sizes = [8, 128], strides = [1, 1]} : vector<8x384xf32> to vector<8x128xf32>
    %114 = vector.extract_strided_slice %111 {offsets = [0, 256], sizes = [8, 128], strides = [1, 1]} : vector<8x384xf32> to vector<8x128xf32>
    %115 = vector.extract_strided_slice %105 {offsets = [0, 384], sizes = [8, 128], strides = [1, 1]} : vector<8x512xf32> to vector<8x128xf32>
    %116 = math.tanh %115 : vector<8x128xf32>
    %117 = arith.mulf %113, %96 : vector<8x128xf32>
    %118 = arith.mulf %112, %116 : vector<8x128xf32>
    %119 = arith.addf %117, %118 : vector<8x128xf32>
    %120 = math.tanh %119 : vector<8x128xf32>
    %121 = arith.mulf %114, %120 : vector<8x128xf32>
    %c0_36 = arith.constant 0 : index
    %c4 = arith.constant 4 : index
    %c0_37 = arith.constant 0 : index
    %122 = vector.load %arg5[%c0_36, %c4, %c0_37] : memref<8x8x128xf32, #tpu.memory_space<vmem>>, vector<8x1x128xf32>
    %123 = vector.shape_cast %122 : vector<8x1x128xf32> to vector<8x128xf32>
    %124 = vector.shape_cast %121 : vector<8x128xf32> to vector<8x1x128xf32>
    tpu.vector_store %arg5[%c0_36, %c4, %c0_37], %124 {strides = array<i32>} : memref<8x8x128xf32, #tpu.memory_space<vmem>>, vector<8x1x128xf32>,
    %c40 = arith.constant 40 : index
    %c0_38 = arith.constant 0 : index
    %125 = vector.load %arg6[%c40, %c0_38] : memref<64x512xf32, #tpu.memory_space<vmem>>, vector<8x512xf32>
    %126 = arith.truncf %121 : vector<8x128xf32> to vector<8x128xbf16>
    %cst_39 = arith.constant dense<0.000000e+00> : vector<8x512xf32>
    %127 = tpu.matmul %126, %7, %cst_39 {dimension_numbers = #tpu.dot_dimension_numbers<[1], [0], [0], [1], [0, 0, 1, 1], [], []>} : vector<8x128xbf16>, vector<128x512xbf16>, vector<8x512xf32> -> vector<8x512xf32>
    %128 = arith.addf %125, %127 : vector<8x512xf32>
    %129 = vector.extract_strided_slice %128 {offsets = [0, 0], sizes = [8, 384], strides = [1, 1]} : vector<8x512xf32> to vector<8x384xf32>
    %130 = arith.negf %129 : vector<8x384xf32>
    %131 = math.exp %130 : vector<8x384xf32>
    %cst_40 = arith.constant 1.000000e+00 : f32
    %132 = vector.broadcast %cst_40 : f32 to vector<8x384xf32>
    %133 = arith.addf %132, %131 : vector<8x384xf32>
    %134 = arith.divf %132, %133 : vector<8x384xf32>
    %135 = vector.extract_strided_slice %134 {offsets = [0, 0], sizes = [8, 128], strides = [1, 1]} : vector<8x384xf32> to vector<8x128xf32>
    %136 = vector.extract_strided_slice %134 {offsets = [0, 128], sizes = [8, 128], strides = [1, 1]} : vector<8x384xf32> to vector<8x128xf32>
    %137 = vector.extract_strided_slice %134 {offsets = [0, 256], sizes = [8, 128], strides = [1, 1]} : vector<8x384xf32> to vector<8x128xf32>
    %138 = vector.extract_strided_slice %128 {offsets = [0, 384], sizes = [8, 128], strides = [1, 1]} : vector<8x512xf32> to vector<8x128xf32>
    %139 = math.tanh %138 : vector<8x128xf32>
    %140 = arith.mulf %136, %119 : vector<8x128xf32>
    %141 = arith.mulf %135, %139 : vector<8x128xf32>
    %142 = arith.addf %140, %141 : vector<8x128xf32>
    %143 = math.tanh %142 : vector<8x128xf32>
    %144 = arith.mulf %137, %143 : vector<8x128xf32>
    %c0_41 = arith.constant 0 : index
    %c5 = arith.constant 5 : index
    %c0_42 = arith.constant 0 : index
    %145 = vector.load %arg5[%c0_41, %c5, %c0_42] : memref<8x8x128xf32, #tpu.memory_space<vmem>>, vector<8x1x128xf32>
    %146 = vector.shape_cast %145 : vector<8x1x128xf32> to vector<8x128xf32>
    %147 = vector.shape_cast %144 : vector<8x128xf32> to vector<8x1x128xf32>
    tpu.vector_store %arg5[%c0_41, %c5, %c0_42], %147 {strides = array<i32>} : memref<8x8x128xf32, #tpu.memory_space<vmem>>, vector<8x1x128xf32>,
    %c48 = arith.constant 48 : index
    %c0_43 = arith.constant 0 : index
    %148 = vector.load %arg6[%c48, %c0_43] : memref<64x512xf32, #tpu.memory_space<vmem>>, vector<8x512xf32>
    %149 = arith.truncf %144 : vector<8x128xf32> to vector<8x128xbf16>
    %cst_44 = arith.constant dense<0.000000e+00> : vector<8x512xf32>
    %150 = tpu.matmul %149, %7, %cst_44 {dimension_numbers = #tpu.dot_dimension_numbers<[1], [0], [0], [1], [0, 0, 1, 1], [], []>} : vector<8x128xbf16>, vector<128x512xbf16>, vector<8x512xf32> -> vector<8x512xf32>
    %151 = arith.addf %148, %150 : vector<8x512xf32>
    %152 = vector.extract_strided_slice %151 {offsets = [0, 0], sizes = [8, 384], strides = [1, 1]} : vector<8x512xf32> to vector<8x384xf32>
    %153 = arith.negf %152 : vector<8x384xf32>
    %154 = math.exp %153 : vector<8x384xf32>
    %cst_45 = arith.constant 1.000000e+00 : f32
    %155 = vector.broadcast %cst_45 : f32 to vector<8x384xf32>
    %156 = arith.addf %155, %154 : vector<8x384xf32>
    %157 = arith.divf %155, %156 : vector<8x384xf32>
    %158 = vector.extract_strided_slice %157 {offsets = [0, 0], sizes = [8, 128], strides = [1, 1]} : vector<8x384xf32> to vector<8x128xf32>
    %159 = vector.extract_strided_slice %157 {offsets = [0, 128], sizes = [8, 128], strides = [1, 1]} : vector<8x384xf32> to vector<8x128xf32>
    %160 = vector.extract_strided_slice %157 {offsets = [0, 256], sizes = [8, 128], strides = [1, 1]} : vector<8x384xf32> to vector<8x128xf32>
    %161 = vector.extract_strided_slice %151 {offsets = [0, 384], sizes = [8, 128], strides = [1, 1]} : vector<8x512xf32> to vector<8x128xf32>
    %162 = math.tanh %161 : vector<8x128xf32>
    %163 = arith.mulf %159, %142 : vector<8x128xf32>
    %164 = arith.mulf %158, %162 : vector<8x128xf32>
    %165 = arith.addf %163, %164 : vector<8x128xf32>
    %166 = math.tanh %165 : vector<8x128xf32>
    %167 = arith.mulf %160, %166 : vector<8x128xf32>
    %c0_46 = arith.constant 0 : index
    %c6 = arith.constant 6 : index
    %c0_47 = arith.constant 0 : index
    %168 = vector.load %arg5[%c0_46, %c6, %c0_47] : memref<8x8x128xf32, #tpu.memory_space<vmem>>, vector<8x1x128xf32>
    %169 = vector.shape_cast %168 : vector<8x1x128xf32> to vector<8x128xf32>
    %170 = vector.shape_cast %167 : vector<8x128xf32> to vector<8x1x128xf32>
    tpu.vector_store %arg5[%c0_46, %c6, %c0_47], %170 {strides = array<i32>} : memref<8x8x128xf32, #tpu.memory_space<vmem>>, vector<8x1x128xf32>,
    %c56 = arith.constant 56 : index
    %c0_48 = arith.constant 0 : index
    %171 = vector.load %arg6[%c56, %c0_48] : memref<64x512xf32, #tpu.memory_space<vmem>>, vector<8x512xf32>
    %172 = arith.truncf %167 : vector<8x128xf32> to vector<8x128xbf16>
    %cst_49 = arith.constant dense<0.000000e+00> : vector<8x512xf32>
    %173 = tpu.matmul %172, %7, %cst_49 {dimension_numbers = #tpu.dot_dimension_numbers<[1], [0], [0], [1], [0, 0, 1, 1], [], []>} : vector<8x128xbf16>, vector<128x512xbf16>, vector<8x512xf32> -> vector<8x512xf32>
    %174 = arith.addf %171, %173 : vector<8x512xf32>
    %175 = vector.extract_strided_slice %174 {offsets = [0, 0], sizes = [8, 384], strides = [1, 1]} : vector<8x512xf32> to vector<8x384xf32>
    %176 = arith.negf %175 : vector<8x384xf32>
    %177 = math.exp %176 : vector<8x384xf32>
    %cst_50 = arith.constant 1.000000e+00 : f32
    %178 = vector.broadcast %cst_50 : f32 to vector<8x384xf32>
    %179 = arith.addf %178, %177 : vector<8x384xf32>
    %180 = arith.divf %178, %179 : vector<8x384xf32>
    %181 = vector.extract_strided_slice %180 {offsets = [0, 0], sizes = [8, 128], strides = [1, 1]} : vector<8x384xf32> to vector<8x128xf32>
    %182 = vector.extract_strided_slice %180 {offsets = [0, 128], sizes = [8, 128], strides = [1, 1]} : vector<8x384xf32> to vector<8x128xf32>
    %183 = vector.extract_strided_slice %180 {offsets = [0, 256], sizes = [8, 128], strides = [1, 1]} : vector<8x384xf32> to vector<8x128xf32>
    %184 = vector.extract_strided_slice %174 {offsets = [0, 384], sizes = [8, 128], strides = [1, 1]} : vector<8x512xf32> to vector<8x128xf32>
    %185 = math.tanh %184 : vector<8x128xf32>
    %186 = arith.mulf %182, %165 : vector<8x128xf32>
    %187 = arith.mulf %181, %185 : vector<8x128xf32>
    %188 = arith.addf %186, %187 : vector<8x128xf32>
    %189 = math.tanh %188 : vector<8x128xf32>
    %190 = arith.mulf %183, %189 : vector<8x128xf32>
    %c0_51 = arith.constant 0 : index
    %c7 = arith.constant 7 : index
    %c0_52 = arith.constant 0 : index
    %191 = vector.load %arg5[%c0_51, %c7, %c0_52] : memref<8x8x128xf32, #tpu.memory_space<vmem>>, vector<8x1x128xf32>
    %192 = vector.shape_cast %191 : vector<8x1x128xf32> to vector<8x128xf32>
    %193 = vector.shape_cast %190 : vector<8x128xf32> to vector<8x1x128xf32>
    tpu.vector_store %arg5[%c0_51, %c7, %c0_52], %193 {strides = array<i32>} : memref<8x8x128xf32, #tpu.memory_space<vmem>>, vector<8x1x128xf32>,
    return
  }
  func.func @transform_0(%arg0: i32) -> (i32, i32) {
    %c0_i32 = arith.constant 0 : i32
    %c0_i32_0 = arith.constant 0 : i32
    %c0_i32_1 = arith.constant 0 : i32
    return %c0_i32, %c0_i32_0 : i32, i32
  }
  func.func @transform_1(%arg0: i32) -> (i32, i32) {
    %c0_i32 = arith.constant 0 : i32
    %c0_i32_0 = arith.constant 0 : i32
    %c0_i32_1 = arith.constant 0 : i32
    return %c0_i32, %c0_i32_0 : i32, i32
  }
  func.func @transform_2(%arg0: i32) -> (i32, i32) {
    %c0_i32 = arith.constant 0 : i32
    %c0_i32_0 = arith.constant 0 : i32
    %c0_i32_1 = arith.constant 0 : i32
    return %c0_i32, %c0_i32_0 : i32, i32
  }
  func.func @transform_3(%arg0: i32) -> (i32, i32) {
    %c0_i32 = arith.constant 0 : i32
    %c0_i32_0 = arith.constant 0 : i32
    %c0_i32_1 = arith.constant 0 : i32
    return %c0_i32, %c0_i32_0 : i32, i32
  }
  func.func @transform_4(%arg0: i32) -> (i32, i32, i32) {
    %c0_i32 = arith.constant 0 : i32
    %c0_i32_0 = arith.constant 0 : i32
    %c0_i32_1 = arith.constant 0 : i32
    %c0_i32_2 = arith.constant 0 : i32
    return %c0_i32, %c0_i32_0, %c0_i32_1 : i32, i32, i32
  }
}

</mosaic_0001>

<bundles_post_ra>
// kernel: tpu_custom_call.1
= control target key start
LH: loop header
LB: loop body
LE: loop exit
PB: predicated region body
PF: predicated region fallthrough
CT: control target
= control target key end

     0   :  { %9 = vsyncpa [#allocation4], 0  ;;  %s3282_s0 = inlined_call_operand.hbm [shape: bf16[64,128], index: 0, kind: input, shape index: {}]   ;;  %s3283_s1 = inlined_call_operand.hbm [shape: bf16[128,512], index: 1, kind: input, shape index: {}]   ;;  %s3284_s2 = inlined_call_operand.hbm [shape: bf16[128,512], index: 2, kind: input, shape index: {}]   ;;  %s3285_s3 = inlined_call_operand.vmem [shape: f32[1,512], index: 3, kind: input, shape index: {}]   ;;  %s3286_s4 = inlined_call_operand.hbm [shape: f32[8,8,128], index: 4, kind: output, shape index: {}]  }
   0x1   :  { %10 = vsyncpa [#allocation7], 0 }
   0x2   :  { %11 = vsyncpa [#allocation5], 0  ;;  %s2623_s15 = smov [#allocation6]  }
   0x3   :  { %s29_s16 = sshll.u32 %s2623_s15, 4  ;;  %s30_s16 = int_to_ptr.vmem [resolvable:$true] %s29_s16 }
   0x4   :  { %s2545_s17 = scalar_lea.vmem %s30_s16, 4096  ;;  %p2550_p1 = scmp.lt.s32.totalorder %s30_s16, %s30_s16 }
   0x5   :  { %p2546_p0 = scmp.ne.s32.totalorder %s30_s16, %s2545_s17  ;;  %p2551_p2 = scmp.lt.s32.totalorder %s2545_s17, %s2545_s17 }
   0x7   :  { %p2552_p3 = por %p2551_p2, %p2550_p1 }
   0x9   :  { %p2553_p4 = pnand %p2552_p3, %p2546_p0 }
   0xb   :  { %2556 = shalt.err (!%p2553_p4)
}
   0xc   :  { %s2624_s18 = smov 256   ;;  %s2625_s19 = smov 16  }
   0xd   :  { %35 = dma.hbm_to_vmem [thread:$0]  %s3283_s1, 4096, %s30_s16, [#allocation7], %s2624_s18, %s2624_s18, %s2625_s19  }
   0xe   :  { %s2626_s22 = smov [#allocation3]  }
   0xf   :  { %s17_s23 = sshll.u32 %s2626_s22, 4  ;;  %s18_s23 = int_to_ptr.vmem [resolvable:$true] %s17_s23 }
  0x10   :  { %s2565_s24 = scalar_lea.vmem %s18_s23, 512  ;;  %p2570_p6 = scmp.lt.s32.totalorder %s18_s23, %s18_s23 }
  0x11   :  { %p2566_p5 = scmp.ne.s32.totalorder %s18_s23, %s2565_s24  ;;  %p2571_p7 = scmp.lt.s32.totalorder %s2565_s24, %s2565_s24 }
  0x13   :  { %p2572_p8 = por %p2571_p7, %p2570_p6 }
  0x15   :  { %p2573_p9 = pnand %p2572_p8, %p2566_p5 }
  0x17   :  { %2576 = shalt.err (!%p2573_p9)
}
  0x18   :  { %s2627_s25 = smov 64   ;;  %s2628_s26 = smov 4  }
  0x19   :  { %23 = dma.hbm_to_vmem [thread:$0]  %s3282_s0, 512, %s18_s23, [#allocation4], %s2627_s25, %s2627_s25, %s2628_s26  }
  0x1a   :  { %s2629_s29 = smov [#allocation8]  }
  0x1b   :  { %s41_s30 = sshll.u32 %s2629_s29, 4  ;;  %s42_s30 = int_to_ptr.vmem [resolvable:$true] %s41_s30 }
  0x1c   :  { %s2585_s1 = scalar_lea.vmem %s42_s30, 4096  ;;  %p2590_p11 = scmp.lt.s32.totalorder %s42_s30, %s42_s30 }
  0x1d   :  { %p2586_p10 = scmp.ne.s32.totalorder %s42_s30, %s2585_s1  ;;  %p2591_p12 = scmp.lt.s32.totalorder %s2585_s1, %s2585_s1 }
  0x1f   :  { %p2592_p13 = por %p2591_p12, %p2590_p11 }
  0x21   :  { %p2593_p0 = pnand %p2592_p13, %p2586_p10 }
  0x23   :  { %2596 = shalt.err (!%p2593_p0)
}
  0x24   :  { %47 = dma.hbm_to_vmem [thread:$0]  %s3284_s2, 4096, %s42_s30, [#allocation7], %s2624_s18, %s2624_s18, %s2625_s19  }
  0x25   :  { %2617 = dma.done.wait [#allocation4], 512  }
  0x26   :  { %2618 = vsyncadd [#allocation4], 4294966784 }
  0x27   :  { %2619 = dma.done.wait [#allocation7], 8192  }
  0x28   :  { %2620 = vsyncadd [#allocation7], 4294959104  ;;  %v3287_v0 = vmov 0   ;;  %v2277_v1 = vld [vmem:[#allocation6 + $0xe4] ss:$16 sps:$4 sm:$0xff]   ;;  %v2338_v44 = vld [vmem:[#allocation3 + $0x8] sm:$0xff]  }
  0x29   :  { %338 = vmatprep.mubr.bf16.mxu0 %v3287_v0  ;;  %411 = vmatprep.mubr.bf16.mxu1 %v3287_v0  ;;  %v2279_v2 = vld [vmem:[#allocation6 + $0xec] ss:$16 sps:$4 sm:$0xff]   ;;  %v2281_v3 = vld [vmem:[#allocation6 + $0xe0] ss:$16 sps:$4 sm:$0xff]   ;;  %v2282_v4 = vld [vmem:[#allocation6 + $0xe8] ss:$16 sps:$4 sm:$0xff]  }
  0x2a   :  { %306 = vmatprep.subr.bf16.mxu0 %v2277_v1  ;;  %379 = vmatprep.subr.bf16.mxu1 %v2279_v2  ;;  %v2283_v5 = vld [vmem:[#allocation6 + $0xc4] ss:$16 sps:$4 sm:$0xff]   ;;  %v2285_v6 = vld [vmem:[#allocation6 + $0xcc] ss:$16 sps:$4 sm:$0xff]   ;;  %v2287_v7 = vld [vmem:[#allocation6 + $0xc0] ss:$16 sps:$4 sm:$0xff]  }
  0x2b   :  { %307 = vmatpush1.bf16.msra.mxu0 %v2281_v3  ;;  %380 = vmatpush1.bf16.msra.mxu1 %v2282_v4  ;;  %v2288_v8 = vld [vmem:[#allocation6 + $0xc8] ss:$16 sps:$4 sm:$0xff]   ;;  %v2289_v9 = vld [vmem:[#allocation6 + $0xa4] ss:$16 sps:$4 sm:$0xff]   ;;  %v2291_v10 = vld [vmem:[#allocation6 + $0xac] ss:$16 sps:$4 sm:$0xff]  }
  0x2c   :  { %308 = vmatprep.subr.bf16.mxu0 %v2283_v5  ;;  %381 = vmatprep.subr.bf16.mxu1 %v2285_v6  ;;  %v2293_v11 = vld [vmem:[#allocation6 + $0xa0] ss:$16 sps:$4 sm:$0xff]   ;;  %v2294_v12 = vld [vmem:[#allocation6 + $0xa8] ss:$16 sps:$4 sm:$0xff]   ;;  %v2295_v13 = vld [vmem:[#allocation6 + $0x84] ss:$16 sps:$4 sm:$0xff]   ;;  %v102_v6 = vlaneseq }
  0x2d   :  { %v2297_v14 = vld [vmem:[#allocation6 + $0x8c] ss:$16 sps:$4 sm:$0xff]   ;;  %v2299_v15 = vld [vmem:[#allocation6 + $0x80] ss:$16 sps:$4 sm:$0xff]   ;;  %v2300_v16 = vld [vmem:[#allocation6 + $0x88] ss:$16 sps:$4 sm:$0xff]  }
  0x2e   :  { %v2301_v17 = vld [vmem:[#allocation6 + $0x64] ss:$16 sps:$4 sm:$0xff]   ;;  %v2303_v18 = vld [vmem:[#allocation6 + $0x6c] ss:$16 sps:$4 sm:$0xff]   ;;  %v2305_v19 = vld [vmem:[#allocation6 + $0x60] ss:$16 sps:$4 sm:$0xff]  }
  0x2f   :  { %309 = vmatpush1.bf16.msra.mxu0 %v2287_v7  ;;  %382 = vmatpush1.bf16.msra.mxu1 %v2288_v8  ;;  %v2306_v20 = vld [vmem:[#allocation6 + $0x68] ss:$16 sps:$4 sm:$0xff]   ;;  %v2307_v21 = vld [vmem:[#allocation6 + $0x44] ss:$16 sps:$4 sm:$0xff]   ;;  %v2309_v22 = vld [vmem:[#allocation6 + $0x4c] ss:$16 sps:$4 sm:$0xff]  }
  0x30   :  { %310 = vmatprep.subr.bf16.mxu0 %v2289_v9  ;;  %383 = vmatprep.subr.bf16.mxu1 %v2291_v10  ;;  %v2311_v23 = vld [vmem:[#allocation6 + $0x40] ss:$16 sps:$4 sm:$0xff]   ;;  %v2312_v24 = vld [vmem:[#allocation6 + $0x48] ss:$16 sps:$4 sm:$0xff]   ;;  %v2313_v25 = vld [vmem:[#allocation6 + $0x24] ss:$16 sps:$4 sm:$0xff]  }
  0x31   :  { %v2315_v26 = vld [vmem:[#allocation6 + $0x2c] ss:$16 sps:$4 sm:$0xff]   ;;  %v2317_v27 = vld [vmem:[#allocation6 + $0x20] ss:$16 sps:$4 sm:$0xff]   ;;  %v2318_v28 = vld [vmem:[#allocation6 + $0x28] ss:$16 sps:$4 sm:$0xff]  }
  0x32   :  { %v2319_v29 = vld [vmem:[#allocation6 + $0x4] ss:$16 sps:$4 sm:$0xff]   ;;  %v2321_v30 = vld [vmem:[#allocation6 + $0xc] ss:$16 sps:$4 sm:$0xff]   ;;  %v2323_v31 = vld [vmem:[#allocation6] ss:$16 sps:$4 sm:$0xff]  }
  0x33   :  { %311 = vmatpush1.bf16.msra.mxu0 %v2293_v11  ;;  %384 = vmatpush1.bf16.msra.mxu1 %v2294_v12  ;;  %v2324_v32 = vld [vmem:[#allocation6 + $0x8] ss:$16 sps:$4 sm:$0xff]   ;;  %v2671_v33 = vld [vmem:[#allocation8 + $0xe4] ss:$16 sps:$4 sm:$0xff]   ;;  %v2673_v34 = vld [vmem:[#allocation8 + $0xec] ss:$16 sps:$4 sm:$0xff]  }
  0x34   :  { %312 = vmatprep.subr.bf16.mxu0 %v2295_v13  ;;  %385 = vmatprep.subr.bf16.mxu1 %v2297_v14  ;;  %v2325_v35 = vld [vmem:[#allocation3] sm:$0xff]   ;;  %v2677_v37 = vld [vmem:[#allocation8 + $0xe8] ss:$16 sps:$4 sm:$0xff]   ;;  %v2683_v39 = vld [vmem:[#allocation8 + $0xcc] ss:$16 sps:$4 sm:$0xff]   ;;  %v2813_v7 = vshrl.u32 %v102_v6, 7 }
  0x35   :  { %v2675_v36 = vld [vmem:[#allocation8 + $0xe0] ss:$16 sps:$4 sm:$0xff]   ;;  %v2681_v38 = vld [vmem:[#allocation8 + $0xc4] ss:$16 sps:$4 sm:$0xff]   ;;  %v2689_v41 = vld [vmem:[#allocation8 + $0xc8] ss:$16 sps:$4 sm:$0xff]  }
  0x36   :  { %v2685_v40 = vld [vmem:[#allocation8 + $0xc0] ss:$16 sps:$4 sm:$0xff]   ;;  %v2693_v42 = vld [vmem:[#allocation8 + $0xa4] ss:$16 sps:$4 sm:$0xff]   ;;  %v2695_v43 = vld [vmem:[#allocation8 + $0xac] ss:$16 sps:$4 sm:$0xff]  }
  0x37   :  { %313 = vmatpush1.bf16.msra.mxu0 %v2299_v15  ;;  %386 = vmatpush1.bf16.msra.mxu1 %v2300_v16  ;;  %v2699_v45 = vld [vmem:[#allocation8 + $0xa0] ss:$16 sps:$4 sm:$0xff]   ;;  %v2701_v46 = vld [vmem:[#allocation8 + $0xa8] ss:$16 sps:$4 sm:$0xff]   ;;  %v2705_v47 = vld [vmem:[#allocation8 + $0x84] ss:$16 sps:$4 sm:$0xff]  }
  0x38   :  { %314 = vmatprep.subr.bf16.mxu0 %v2301_v17  ;;  %387 = vmatprep.subr.bf16.mxu1 %v2303_v18  ;;  %v2709_v48 = vld [vmem:[#allocation8 + $0x8c] ss:$16 sps:$4 sm:$0xff]   ;;  %v2711_v49 = vld [vmem:[#allocation8 + $0x80] ss:$16 sps:$4 sm:$0xff]   ;;  %v2713_v50 = vld [vmem:[#allocation8 + $0x88] ss:$16 sps:$4 sm:$0xff]  }
  0x39   :  { %v2717_v51 = vld [vmem:[#allocation8 + $0x64] ss:$16 sps:$4 sm:$0xff]   ;;  %v2721_v52 = vld [vmem:[#allocation8 + $0x6c] ss:$16 sps:$4 sm:$0xff]   ;;  %v2727_v54 = vld [vmem:[#allocation8 + $0x60] ss:$16 sps:$4 sm:$0xff]  }
  0x3a   :  { %v2351_v53 = vld [vmem:[#allocation3 + $0x10] sm:$0xff]   ;;  %v2729_v55 = vld [vmem:[#allocation8 + $0x68] ss:$16 sps:$4 sm:$0xff]   ;;  %v2735_v57 = vld [vmem:[#allocation8 + $0x4c] ss:$16 sps:$4 sm:$0xff]   ;;  %v112_v8 = vsub.s32 2, %v2813_v7 }
  0x3b   :  { %315 = vmatpush1.bf16.msra.mxu0 %v2305_v19  ;;  %388 = vmatpush1.bf16.msra.mxu1 %v2306_v20  ;;  %v2733_v56 = vld [vmem:[#allocation8 + $0x44] ss:$16 sps:$4 sm:$0xff]   ;;  %v2739_v58 = vld [vmem:[#allocation8 + $0x40] ss:$16 sps:$4 sm:$0xff]   ;;  %v2741_v59 = vld [vmem:[#allocation8 + $0x48] ss:$16 sps:$4 sm:$0xff]  }
  0x3c   :  { %316 = vmatprep.subr.bf16.mxu0 %v2307_v21  ;;  %389 = vmatprep.subr.bf16.mxu1 %v2309_v22  ;;  %v2745_v60 = vld [vmem:[#allocation8 + $0x24] ss:$16 sps:$4 sm:$0xff]   ;;  %v2747_v61 = vld [vmem:[#allocation8 + $0x2c] ss:$16 sps:$4 sm:$0xff]   ;;  %v2753_v63 = vld [vmem:[#allocation8 + $0x20] ss:$16 sps:$4 sm:$0xff]  }
  0x3d   :  { %v2364_v62 = vld [vmem:[#allocation3 + $0x18] sm:$0xff]   ;;  %v2759_v2 = vld [vmem:[#allocation8 + $0x4] ss:$16 sps:$4 sm:$0xff]   ;;  %v2765_v4 = vld [vmem:[#allocation8] ss:$16 sps:$4 sm:$0xff]   ;;  %v104_v9 = vsub.s32 0, %v2813_v7 }
  0x3e   :  { %v2755_v1 = vld [vmem:[#allocation8 + $0x28] ss:$16 sps:$4 sm:$0xff]   ;;  %v2761_v3 = vld [vmem:[#allocation8 + $0xc] ss:$16 sps:$4 sm:$0xff]   ;;  %v116_v10 = vsub.s32 3, %v2813_v7  ;;  %v108_v15 = vsub.s32 1, %v2813_v7 }
  0x3f   :  { %317 = vmatpush1.bf16.msra.mxu0 %v2311_v23  ;;  %390 = vmatpush1.bf16.msra.mxu1 %v2312_v24  ;;  %v2767_v5 = vld [vmem:[#allocation8 + $0x8] ss:$16 sps:$4 sm:$0xff]   ;;  %v100_v11 = vld [vmem:[%s3285_s3] sm:$0xf]  ;;  %s2632_s3 = smov [#allocation9]  }
  0x40   :  { %318 = vmatprep.subr.bf16.mxu0 %v2313_v25  ;;  %391 = vmatprep.subr.bf16.mxu1 %v2315_v26  ;;  %v2825_v14 = vrot.slane %v100_v11, %v112_v8  ;;  %v105_v18 = vrot.slane %v100_v11, %v104_v9  ;;  %v2832_v19 = vrot.slane %v100_v11, %v116_v10  ;;  %s2128_s7 = sshll.u32 %s2632_s3, 4  ;;  %s2129_s7 = int_to_ptr.vmem [resolvable:$true] %s2128_s7 }
  0x41   :  { %v109_v22 = vrot.slane %v100_v11, %v108_v15  ;;  %s2597_s8 = scalar_lea.vmem %s2129_s7, 1024  ;;  %p2602_p2 = scmp.lt.s32.totalorder %s2129_s7, %s2129_s7 }
  0x42   :  { %p2598_p1 = scmp.ne.s32.totalorder %s2129_s7, %s2597_s8  ;;  %p2603_p3 = scmp.lt.s32.totalorder %s2597_s8, %s2597_s8 }
  0x43   :  { %319 = vmatpush1.bf16.msra.mxu0 %v2317_v27  ;;  %392 = vmatpush1.bf16.msra.mxu1 %v2318_v28 }
  0x44   :  { %320 = vmatprep.subr.bf16.mxu0 %v2319_v29  ;;  %393 = vmatprep.subr.bf16.mxu1 %v2321_v30  ;;  %p2604_p4 = por %p2603_p3, %p2602_p2 }
  0x46   :  { %p2605_p5 = pnand %p2604_p4, %p2598_p1 }
  0x47   :  { %321 = vmatpush1.bf16.msra.mxu0 %v2323_v31  ;;  %394 = vmatpush1.bf16.msra.mxu1 %v2324_v32 }
  0x48   :  { %680 = vmatprep.subr.bf16.mxu0 %v2671_v33  ;;  %721 = vmatprep.subr.bf16.mxu1 %v2673_v34 }
  0x4a   :  { %339 = vmatmul.mubr.bf16.vlgmr.msra.gmra.mxu0 %v2325_v35  ;;  %412 = vmatmul.mubr.bf16.vlgmr.msra.gmra.mxu1 %v2325_v35 }
  0x4b   :  { %681 = vmatpush1.bf16.msra.mxu0 %v2675_v36  ;;  %722 = vmatpush1.bf16.msra.mxu1 %v2677_v37 }
  0x4c   :  { %682 = vmatprep.subr.bf16.mxu0 %v2681_v38  ;;  %723 = vmatprep.subr.bf16.mxu1 %v2683_v39 }
  0x4d   :  { %348 = vmatprep.mubr.bf16.mxu0 %v3287_v0  ;;  %421 = vmatprep.mubr.bf16.mxu1 %v3287_v0 }
  0x4f   :  { %683 = vmatpush1.bf16.msra.mxu0 %v2685_v40  ;;  %724 = vmatpush1.bf16.msra.mxu1 %v2689_v41 }
  0x50   :  { %684 = vmatprep.subr.bf16.mxu0 %v2693_v42  ;;  %725 = vmatprep.subr.bf16.mxu1 %v2695_v43 }
  0x52   :  { %349 = vmatmul.mubr.bf16.gmra.mxu0 %v2338_v44  ;;  %422 = vmatmul.mubr.bf16.gmra.mxu1 %v2338_v44 }
  0x53   :  { %685 = vmatpush1.bf16.msra.mxu0 %v2699_v45  ;;  %726 = vmatpush1.bf16.msra.mxu1 %v2701_v46 }
  0x54   :  { %686 = vmatprep.subr.bf16.mxu0 %v2705_v47  ;;  %727 = vmatprep.subr.bf16.mxu1 %v2709_v48 }
  0x55   :  { %358 = vmatprep.mubr.bf16.mxu0 %v3287_v0  ;;  %431 = vmatprep.mubr.bf16.mxu1 %v3287_v0 }
  0x57   :  { %687 = vmatpush1.bf16.msra.mxu0 %v2711_v49  ;;  %728 = vmatpush1.bf16.msra.mxu1 %v2713_v50 }
  0x58   :  { %688 = vmatprep.subr.bf16.mxu0 %v2717_v51  ;;  %729 = vmatprep.subr.bf16.mxu1 %v2721_v52 }
  0x5a   :  { %359 = vmatmul.mubr.bf16.gmra.mxu0 %v2351_v53  ;;  %432 = vmatmul.mubr.bf16.gmra.mxu1 %v2351_v53 }
  0x5b   :  { %689 = vmatpush1.bf16.msra.mxu0 %v2727_v54  ;;  %730 = vmatpush1.bf16.msra.mxu1 %v2729_v55 }
  0x5c   :  { %690 = vmatprep.subr.bf16.mxu0 %v2733_v56  ;;  %731 = vmatprep.subr.bf16.mxu1 %v2735_v57 }
  0x5d   :  { %368 = vmatprep.mubr.bf16.mxu0 %v3287_v0  ;;  %441 = vmatprep.mubr.bf16.mxu1 %v3287_v0 }
  0x5f   :  { %691 = vmatpush1.bf16.msra.mxu0 %v2739_v58  ;;  %732 = vmatpush1.bf16.msra.mxu1 %v2741_v59 }
  0x60   :  { %692 = vmatprep.subr.bf16.mxu0 %v2745_v60  ;;  %733 = vmatprep.subr.bf16.mxu1 %v2747_v61 }
  0x62   :  { %369 = vmatmul.mubr.bf16.gmra.mxu0 %v2364_v62  ;;  %442 = vmatmul.mubr.bf16.gmra.mxu1 %v2364_v62 }
  0x63   :  { %693 = vmatpush1.bf16.msra.mxu0 %v2753_v63  ;;  %734 = vmatpush1.bf16.msra.mxu1 %v2755_v1 }
  0x64   :  { %694 = vmatprep.subr.bf16.mxu0 %v2759_v2  ;;  %735 = vmatprep.subr.bf16.mxu1 %v2761_v3 }
  0x65   :  { %712 = vmatprep.mubr.bf16.mxu0 %v3287_v0  ;;  %753 = vmatprep.mubr.bf16.mxu1 %v3287_v0 }
  0x67   :  { %695 = vmatpush1.bf16.msra.mxu0 %v2765_v4  ;;  %736 = vmatpush1.bf16.msra.mxu1 %v2767_v5 }
  0x68   :  { %861 = vmatprep.subr.bf16.mxu0 %v2671_v33  ;;  %902 = vmatprep.subr.bf16.mxu1 %v2673_v34 }
  0x6a   :  { %713 = vmatmul.mubr.bf16.vlgmr.msra.gmra.mxu0 %v3287_v0  ;;  %754 = vmatmul.mubr.bf16.vlgmr.msra.gmra.mxu1 %v3287_v0 }
  0x6b   :  { %862 = vmatpush1.bf16.msra.mxu0 %v2675_v36  ;;  %903 = vmatpush1.bf16.msra.mxu1 %v2677_v37 }
  0x6c   :  { %863 = vmatprep.subr.bf16.mxu0 %v2681_v38  ;;  %904 = vmatprep.subr.bf16.mxu1 %v2683_v39 }
  0x6d   :  { %893 = vmatprep.mubr.bf16.mxu0 %v3287_v0  ;;  %934 = vmatprep.mubr.bf16.mxu1 %v3287_v0 }
  0x6f   :  { %864 = vmatpush1.bf16.msra.mxu0 %v2685_v40  ;;  %905 = vmatpush1.bf16.msra.mxu1 %v2689_v41 }
  0x70   :  { %865 = vmatprep.subr.bf16.mxu0 %v2693_v42  ;;  %906 = vmatprep.subr.bf16.mxu1 %v2695_v43 }
  0x73   :  { %866 = vmatpush1.bf16.msra.mxu0 %v2699_v45  ;;  %907 = vmatpush1.bf16.msra.mxu1 %v2701_v46 }
  0x74   :  { %867 = vmatprep.subr.bf16.mxu0 %v2705_v47  ;;  %908 = vmatprep.subr.bf16.mxu1 %v2709_v48 }
  0x77   :  { %868 = vmatpush1.bf16.msra.mxu0 %v2711_v49  ;;  %909 = vmatpush1.bf16.msra.mxu1 %v2713_v50 }
  0x78   :  { %869 = vmatprep.subr.bf16.mxu0 %v2717_v51  ;;  %910 = vmatprep.subr.bf16.mxu1 %v2721_v52 }
  0x7b   :  { %870 = vmatpush1.bf16.msra.mxu0 %v2727_v54  ;;  %911 = vmatpush1.bf16.msra.mxu1 %v2729_v55 }
  0x7c   :  { %871 = vmatprep.subr.bf16.mxu0 %v2733_v56  ;;  %912 = vmatprep.subr.bf16.mxu1 %v2735_v57 }
  0x7f   :  { %872 = vmatpush1.bf16.msra.mxu0 %v2739_v58  ;;  %913 = vmatpush1.bf16.msra.mxu1 %v2741_v59 }
  0x80   :  { %873 = vmatprep.subr.bf16.mxu0 %v2745_v60  ;;  %914 = vmatprep.subr.bf16.mxu1 %v2747_v61 }
  0x83   :  { %874 = vmatpush1.bf16.msra.mxu0 %v2753_v63  ;;  %915 = vmatpush1.bf16.msra.mxu1 %v2755_v1 }
  0x84   :  { %875 = vmatprep.subr.bf16.mxu0 %v2759_v2  ;;  %916 = vmatprep.subr.bf16.mxu1 %v2761_v3 }
  0x87   :  { %876 = vmatpush1.bf16.msra.mxu0 %v2765_v4  ;;  %917 = vmatpush1.bf16.msra.mxu1 %v2767_v5 }
  0x88   :  { %1042 = vmatprep.subr.bf16.mxu0 %v2671_v33  ;;  %1083 = vmatprep.subr.bf16.mxu1 %v2673_v34 }
 0x10a   :  { %v2821_v12 = vpop.f32.mrf.mxu0  ;;  %v2823_v13 = vpop.f32.mrf.mxu1 }
 0x10c   :  { %v2828_v16 = vpop.f32.mrf.mxu0  ;;  %v2830_v17 = vpop.f32.mrf.mxu1 }
 0x10e   :  { %v344_v20 = vpop.f32.mrf.mxu0  ;;  %v417_v21 = vpop.f32.mrf.mxu1 }
 0x10f   :  { %v2834_v23 = vadd.f32 %v344_v20, %v105_v18  ;;  %v2837_v24 = vadd.f32 %v417_v21, %v2825_v14 }
 0x110   :  { %v346_v25 = vpop.f32.mrf.mxu0  ;;  %v419_v26 = vpop.f32.mrf.mxu1 }
 0x111   :  { %v2839_v27 = vadd.f32 %v346_v25, %v109_v22  ;;  %v2842_v28 = vadd.f32 %v419_v26, %v2832_v19 }
 0x112   :  { %v350_v29 = vpop.f32.mrf.mxu0  ;;  %v423_v30 = vpop.f32.mrf.mxu1 }
 0x113   :  { %v2844_v31 = vadd.f32 %v350_v29, %v105_v18  ;;  %v2847_v32 = vadd.f32 %v423_v30, %v2825_v14 }
 0x114   :  { %v352_v35 = vpop.f32.mrf.mxu0  ;;  %v425_v44 = vpop.f32.mrf.mxu1 }
 0x115   :  { %3289 = vst [vmem:[#allocation13_spill] sm:$0xff] %v2847_v32  ;;  %v2849_v53 = vadd.f32 %v352_v35, %v109_v22  ;;  %v2852_v62 = vadd.f32 %v425_v44, %v2832_v19 }
 0x116   :  { %v354_v6 = vpop.f32.mrf.mxu0  ;;  %v427_v8 = vpop.f32.mrf.mxu1 }
 0x117   :  { %3290 = vst [vmem:[#allocation14_spill] sm:$0xff] %v2852_v62  ;;  %v2854_v9 = vadd.f32 %v354_v6, %v105_v18  ;;  %v2857_v10 = vadd.f32 %v427_v8, %v2825_v14 }
 0x118   :  { %v356_v11 = vpop.f32.mrf.mxu0  ;;  %v429_v15 = vpop.f32.mrf.mxu1 }
 0x119   :  { %3291 = vst [vmem:[#allocation15_spill] sm:$0xff] %v2854_v9  ;;  %3292 = vst [vmem:[#allocation16_spill] sm:$0xff] %v2857_v10  ;;  %v2859_v20 = vadd.f32 %v356_v11, %v109_v22  ;;  %v2862_v21 = vadd.f32 %v429_v15, %v2832_v19 }
 0x11a   :  { %v360_v25 = vpop.f32.mrf.mxu0  ;;  %v433_v26 = vpop.f32.mrf.mxu1 }
 0x11b   :  { %3293 = vst [vmem:[#allocation17_spill] sm:$0xff] %v2859_v20  ;;  %3294 = vst [vmem:[#allocation18_spill] sm:$0xff] %v2862_v21  ;;  %v2864_v29 = vadd.f32 %v360_v25, %v105_v18  ;;  %v2867_v30 = vadd.f32 %v433_v26, %v2825_v14 }
 0x11c   :  { %v362_v35 = vpop.f32.mrf.mxu0  ;;  %v435_v44 = vpop.f32.mrf.mxu1 }
 0x11d   :  { %3295 = vst [vmem:[#allocation19_spill] sm:$0xff] %v2864_v29  ;;  %3296 = vst [vmem:[#allocation20_spill] sm:$0xff] %v2867_v30  ;;  %v2869_v6 = vadd.f32 %v362_v35, %v109_v22  ;;  %v2872_v8 = vadd.f32 %v435_v44, %v2832_v19 }
 0x11e   :  { %v364_v0 = vpop.f32.mrf.mxu0  ;;  %v437_v11 = vpop.f32.mrf.mxu1 }
 0x11f   :  { %3297 = vst [vmem:[#allocation21_spill] sm:$0xff] %v2869_v6  ;;  %3298 = vst [vmem:[#allocation22_spill] sm:$0xff] %v2872_v8  ;;  %v2874_v10 = vadd.f32 %v364_v0, %v105_v18  ;;  %v2877_v15 = vadd.f32 %v437_v11, %v2825_v14 }
 0x120   :  { %v366_v21 = vpop.f32.mrf.mxu0  ;;  %v439_v25 = vpop.f32.mrf.mxu1 }
 0x121   :  { %3299 = vst [vmem:[#allocation23_spill] sm:$0xff] %v2874_v10  ;;  %3300 = vst [vmem:[#allocation24_spill] sm:$0xff] %v2877_v15  ;;  %v2879_v29 = vadd.f32 %v366_v21, %v109_v22  ;;  %v2882_v26 = vadd.f32 %v439_v25, %v2832_v19 }
 0x122   :  { %v370_v30 = vpop.f32.mrf.mxu0  ;;  %v443_v35 = vpop.f32.mrf.mxu1 }
 0x123   :  { %3301 = vst [vmem:[#allocation25_spill] sm:$0xff] %v2879_v29  ;;  %3302 = vst [vmem:[#allocation26_spill] sm:$0xff] %v2882_v26  ;;  %v2884_v6 = vadd.f32 %v370_v30, %v105_v18  ;;  %v2887_v44 = vadd.f32 %v443_v35, %v2825_v14 }
 0x124   :  { %v372_v8 = vpop.f32.mrf.mxu0  ;;  %v445_v0 = vpop.f32.mrf.mxu1 }
 0x125   :  { %3303 = vst [vmem:[#allocation27_spill] sm:$0xff] %v2884_v6  ;;  %3304 = vst [vmem:[#allocation28_spill] sm:$0xff] %v2887_v44  ;;  %v2889_v10 = vadd.f32 %v372_v8, %v109_v22  ;;  %v2892_v11 = vadd.f32 %v445_v0, %v2832_v19  ;;  %v341_v6 = vadd.f32 %v2821_v12, %v105_v18 }
 0x126   :  { %v374_v15 = vpop.f32.mrf.mxu0  ;;  %v447_v21 = vpop.f32.mrf.mxu1  ;;  %v343_v0 = vadd.f32 %v2828_v16, %v109_v22 }
 0x127   :  { %3305 = vst [vmem:[#allocation29_spill] sm:$0xff] %v2889_v10  ;;  %3306 = vst [vmem:[#allocation30_spill] sm:$0xff] %v2892_v11  ;;  %v2894_v29 = vadd.f32 %v374_v15, %v105_v18  ;;  %v2897_v25 = vadd.f32 %v447_v21, %v2825_v14  ;;  %v414_v18 = vadd.f32 %v2823_v13, %v2825_v14 }
 0x128   :  { %v376_v26 = vpop.f32.mrf.mxu0  ;;  %v449_v30 = vpop.f32.mrf.mxu1 }
 0x129   :  { %3307 = vst [vmem:[#allocation31_spill] sm:$0xff] %v2894_v29  ;;  %3308 = vst [vmem:[#allocation32_spill] sm:$0xff] %v2897_v25  ;;  %v2900_v35 = vadd.f32 %v376_v26, %v109_v22  ;;  %v2903_v44 = vadd.f32 %v449_v30, %v2832_v19  ;;  %v416_v30 = vadd.f32 %v2830_v17, %v2832_v19  ;;  %v2631_v17 = vmov 1966171168  }
 0x12a   :  { %v714_v8 = vpop.f32.mrf.mxu0  ;;  %v755_v10 = vpop.f32.mrf.mxu1  ;;  %v793_v19 = vunpack.c.l.s4 %v2631_v17 }
 0x12b   :  { %v762_v11 = vadd.f32 %v714_v8, %v341_v6  ;;  %v764_v26 = vadd.f32 %v755_v10, %v414_v18 }
 0x12c   :  { %v716_v20 = vpop.f32.mrf.mxu0  ;;  %v757_v15 = vpop.f32.mrf.mxu1 }
 0x12d   :  { %v2209_v29 = vmul.f32 -1.442695, %v762_v11  ;;  %v763_v9 = vadd.f32 %v716_v20, %v343_v0  ;;  %v2211_v16 = vmul.f32 -1.442695, %v764_v26  ;;  %v765_v6 = vadd.f32 %v757_v15, %v416_v30 }
 0x12e   :  { %v718_v21 = vpop.f32.mrf.mxu0  ;;  %v759_v25 = vpop.f32.mrf.mxu1  ;;  %v794_v0 = vunpack.c.0.s8 %v793_v19 }
 0x12f   :  { %2377 = vpow2.f32 %v2209_v29  ;;  %v2210_v62 = vmul.f32 -1.442695, %v763_v9 }
 0x130   :  { %v719_v32 = vpop.f32.mrf.mxu0  ;;  %v760_v12 = vpop.f32.mrf.mxu1  ;;  %v2914_v21 = vsub.s32 %v794_v0, %v2813_v7 }
 0x131   :  { %2379 = vpow2.f32 %v2210_v62 }
 0x132   :  { %2381 = vpow2.f32 %v2211_v16 }
 0x13c   :  { %v2378_v22 = vpop.eup %2377 }
 0x13d   :  { %v775_v8 = vadd.f32 1.0, %v2378_v22 }
 0x13e   :  { %v2380_v11 = vpop.eup %2379 }
 0x13f   :  { %2383 = vrcp.f32 %v775_v8  ;;  %v776_v20 = vadd.f32 1.0, %v2380_v11  ;;  %v2382_v32 = vpop.eup %2381 }
 0x140   :  { %2385 = vtanh.f32 %v765_v6  ;;  %v777_v25 = vadd.f32 1.0, %v2382_v32 }
 0x141   :  { %2387 = vrcp.f32 %v776_v20 }
 0x142   :  { %2389 = vrcp.f32 %v777_v25 }
 0x14c   :  { %v2384_v9 = vpop.eup %2383 }
 0x14d   :  { %v2386_v62 = vpop.eup %2385 }
 0x14e   :  { %v2388_v29 = vpop.eup %2387  ;;  %v786_v14 = vmul.f32 %v2386_v62, %v2384_v9  ;;  %v3309_v9 = vmov 0  }
 0x14f   :  { %v785_v13 = vmul.f32 0.0, %v2388_v29  ;;  %v2390_v15 = vpop.eup %2389 }
 0x151   :  { %v2910_v10 = vadd.f32 %v786_v14, %v785_v13 }
 0x153   :  { %2391 = vtanh.f32 %v2910_v10 }
 0x160   :  { %v2392_v12 = vpop.eup %2391 }
 0x161   :  { %v789_v18 = vmul.f32 %v2392_v12, %v2390_v15 }
 0x163   :  { %v791_v26 = vcombine.high %v789_v18, %v789_v18  ;;  %v798_v30 = vrot.slane %v789_v18, %v2914_v21  ;;  %v860_v16 = vpack.c.bf16 %v789_v18, %v789_v18 }
 0x165   :  { %v805_v22 = vrot.slane %v791_v26, %v2914_v21  ;;  %v806_v6 = vcombine.high %v798_v30, %v798_v30  ;;  %v814_v8 = vrot.slane %v798_v30, %v2914_v21  ;;  %2212 = vst.sshfl [vmem:[#allocation9] sm:$0x1 pattern:$0x73625140] %v798_v30  ;;  %894 = vmatmul.mubr.bf16.vlgmr.msra.gmra.mxu0 %v860_v16 }
 0x166   :  { %935 = vmatmul.mubr.bf16.vlgmr.msra.gmra.mxu1 %v860_v16  ;;  %1043 = vmatpush1.bf16.msra.mxu0 %v2675_v36 }
 0x167   :  { %1084 = vmatpush1.bf16.msra.mxu1 %v2677_v37  ;;  %v807_v7 = vcombine.high %v805_v22, %v805_v22  ;;  %v821_v11 = vrot.slane %v805_v22, %v2914_v21  ;;  %v828_v20 = vrot.slane %v806_v6, %v2914_v21  ;;  %v836_v32 = vcombine.high %v814_v8, %v814_v8 }
 0x168   :  { %2213 = vst.sshfl [vmem:[#allocation9 + $0x8] sm:$0x1 pattern:$0x73625140] %v806_v6  ;;  %1044 = vmatprep.subr.bf16.mxu0 %v2681_v38  ;;  %1085 = vmatprep.subr.bf16.mxu1 %v2683_v39 }
 0x169   :  { %2214 = vst.sshfl [vmem:[#allocation9 + $0x20] sm:$0x1 pattern:$0x73625140] %v805_v22  ;;  %1074 = vmatprep.mubr.bf16.mxu0 %v3309_v9  ;;  %v835_v62 = vrot.slane %v807_v7, %v2914_v21  ;;  %v837_v29 = vcombine.high %v821_v11, %v821_v11  ;;  %v838_v25 = vcombine.high %v828_v20, %v828_v20  ;;  %850 = vst [vmem:[#allocation9 + $0x10] sm:$0x1] %v836_v32 }
 0x16a   :  { %2215 = vst.sshfl [vmem:[#allocation9 + $0x28] sm:$0x1 pattern:$0x73625140] %v807_v7  ;;  %1115 = vmatprep.mubr.bf16.mxu1 %v3309_v9  ;;  %1045 = vmatpush1.bf16.msra.mxu0 %v2685_v40 }
 0x16b   :  { %1086 = vmatpush1.bf16.msra.mxu1 %v2689_v41  ;;  %v839_v13 = vcombine.high %v835_v62, %v835_v62  ;;  %851 = vst [vmem:[#allocation9 + $0x18] sm:$0x1] %v838_v25  ;;  %854 = vst [vmem:[#allocation9 + $0x30] sm:$0x1] %v837_v29  ;;  %1046 = vmatprep.subr.bf16.mxu0 %v2693_v42 }
 0x16c   :  { %1087 = vmatprep.subr.bf16.mxu1 %v2695_v43 }
 0x16d   :  { %855 = vst [vmem:[#allocation9 + $0x38] sm:$0x1] %v839_v13 }
 0x16e   :  { %1047 = vmatpush1.bf16.msra.mxu0 %v2699_v45 }
 0x16f   :  { %1088 = vmatpush1.bf16.msra.mxu1 %v2701_v46  ;;  %1048 = vmatprep.subr.bf16.mxu0 %v2705_v47 }
 0x170   :  { %1089 = vmatprep.subr.bf16.mxu1 %v2709_v48 }
 0x172   :  { %1049 = vmatpush1.bf16.msra.mxu0 %v2711_v49 }
 0x173   :  { %1090 = vmatpush1.bf16.msra.mxu1 %v2713_v50  ;;  %1050 = vmatprep.subr.bf16.mxu0 %v2717_v51 }
 0x174   :  { %1091 = vmatprep.subr.bf16.mxu1 %v2721_v52 }
 0x176   :  { %1051 = vmatpush1.bf16.msra.mxu0 %v2727_v54 }
 0x177   :  { %1092 = vmatpush1.bf16.msra.mxu1 %v2729_v55  ;;  %1052 = vmatprep.subr.bf16.mxu0 %v2733_v56 }
 0x178   :  { %1093 = vmatprep.subr.bf16.mxu1 %v2735_v57 }
 0x17a   :  { %1053 = vmatpush1.bf16.msra.mxu0 %v2739_v58 }
 0x17b   :  { %1094 = vmatpush1.bf16.msra.mxu1 %v2741_v59  ;;  %1054 = vmatprep.subr.bf16.mxu0 %v2745_v60 }
 0x17c   :  { %1095 = vmatprep.subr.bf16.mxu1 %v2747_v61 }
 0x17e   :  { %1055 = vmatpush1.bf16.msra.mxu0 %v2753_v63 }
 0x17f   :  { %1096 = vmatpush1.bf16.msra.mxu1 %v2755_v1  ;;  %1056 = vmatprep.subr.bf16.mxu0 %v2759_v2 }
 0x180   :  { %1097 = vmatprep.subr.bf16.mxu1 %v2761_v3 }
 0x182   :  { %1057 = vmatpush1.bf16.msra.mxu0 %v2765_v4 }
 0x183   :  { %1098 = vmatpush1.bf16.msra.mxu1 %v2767_v5  ;;  %1223 = vmatprep.subr.bf16.mxu0 %v2671_v33 }
 0x184   :  { %1264 = vmatprep.subr.bf16.mxu1 %v2673_v34 }
 0x225   :  { %v895_v14 = vpop.f32.mrf.mxu0 }
 0x226   :  { %v936_v17 = vpop.f32.mrf.mxu1  ;;  %v943_v19 = vadd.f32 %v895_v14, %v2834_v23 }
 0x227   :  { %v897_v0 = vpop.f32.mrf.mxu0  ;;  %v945_v8 = vadd.f32 %v936_v17, %v2837_v24 }
 0x228   :  { %v938_v15 = vpop.f32.mrf.mxu1  ;;  %v2216_v12 = vmul.f32 -1.442695, %v943_v19  ;;  %v944_v18 = vadd.f32 %v897_v0, %v2839_v27 }
 0x229   :  { %v899_v26 = vpop.f32.mrf.mxu0  ;;  %v2218_v7 = vmul.f32 -1.442695, %v945_v8  ;;  %v946_v11 = vadd.f32 %v938_v15, %v2842_v28 }
 0x22a   :  { %v940_v30 = vpop.f32.mrf.mxu1  ;;  %2393 = vpow2.f32 %v2216_v12  ;;  %v2217_v16 = vmul.f32 -1.442695, %v944_v18 }
 0x22b   :  { %v900_v22 = vpop.f32.mrf.mxu0 }
 0x22c   :  { %v941_v6 = vpop.f32.mrf.mxu1  ;;  %2395 = vpow2.f32 %v2217_v16 }
 0x22d   :  { %2397 = vpow2.f32 %v2218_v7 }
 0x22e   :  { %2399 = vtanh.f32 %v946_v11 }
 0x237   :  { %v2394_v20 = vpop.eup %2393 }
 0x238   :  { %v956_v32 = vadd.f32 1.0, %v2394_v20 }
 0x239   :  { %v2396_v23 = vpop.eup %2395 }
 0x23a   :  { %2401 = vrcp.f32 %v956_v32  ;;  %v957_v62 = vadd.f32 1.0, %v2396_v23  ;;  %v2398_v27 = vpop.eup %2397 }
 0x23b   :  { %v2400_v29 = vpop.eup %2399  ;;  %v958_v19 = vadd.f32 1.0, %v2398_v27 }
 0x23c   :  { %2403 = vrcp.f32 %v957_v62 }
 0x23d   :  { %2405 = vrcp.f32 %v958_v19 }
 0x247   :  { %v2402_v25 = vpop.eup %2401 }
 0x248   :  { %v967_v13 = vmul.f32 %v2402_v25, %v2400_v29 }
 0x249   :  { %v2404_v14 = vpop.eup %2403 }
 0x24a   :  { %v966_v0 = vmul.f32 %v2404_v14, %v2910_v10  ;;  %v2406_v28 = vpop.eup %2405 }
 0x24c   :  { %v2961_v24 = vadd.f32 %v967_v13, %v966_v0 }
 0x24e   :  { %2407 = vtanh.f32 %v2961_v24 }
 0x25b   :  { %v2408_v17 = vpop.eup %2407 }
 0x25c   :  { %v970_v15 = vmul.f32 %v2408_v17, %v2406_v28 }
 0x25e   :  { %v972_v12 = vcombine.high %v970_v15, %v970_v15  ;;  %v979_v18 = vrot.slane %v970_v15, %v2914_v21  ;;  %v1041_v26 = vpack.c.bf16 %v970_v15, %v970_v15 }
 0x260   :  { %v986_v30 = vrot.slane %v972_v12, %v2914_v21  ;;  %v987_v16 = vcombine.high %v979_v18, %v979_v18  ;;  %v995_v22 = vrot.slane %v979_v18, %v2914_v21  ;;  %2219 = vst.sshfl [vmem:[#allocation9 + $0x1] sm:$0x1 pattern:$0x73625140] %v979_v18  ;;  %1075 = vmatmul.mubr.bf16.vlgmr.msra.gmra.mxu0 %v1041_v26  ;;  %v3310_v18 = vld [vmem:[#allocation13_spill] sm:$0xff] }
 0x261   :  { %1116 = vmatmul.mubr.bf16.vlgmr.msra.gmra.mxu1 %v1041_v26  ;;  %1224 = vmatpush1.bf16.msra.mxu0 %v2675_v36 }
 0x262   :  { %1265 = vmatpush1.bf16.msra.mxu1 %v2677_v37  ;;  %v988_v10 = vcombine.high %v986_v30, %v986_v30  ;;  %v1002_v6 = vrot.slane %v986_v30, %v2914_v21  ;;  %v1009_v8 = vrot.slane %v987_v16, %v2914_v21  ;;  %v1017_v7 = vcombine.high %v995_v22, %v995_v22 }
 0x263   :  { %2220 = vst.sshfl [vmem:[#allocation9 + $0x9] sm:$0x1 pattern:$0x73625140] %v987_v16  ;;  %1225 = vmatprep.subr.bf16.mxu0 %v2681_v38  ;;  %1266 = vmatprep.subr.bf16.mxu1 %v2683_v39 }
 0x264   :  { %2221 = vst.sshfl [vmem:[#allocation9 + $0x21] sm:$0x1 pattern:$0x73625140] %v986_v30  ;;  %1255 = vmatprep.mubr.bf16.mxu0 %v3309_v9  ;;  %v1016_v11 = vrot.slane %v988_v10, %v2914_v21  ;;  %v1018_v20 = vcombine.high %v1002_v6, %v1002_v6  ;;  %v1019_v32 = vcombine.high %v1009_v8, %v1009_v8  ;;  %1031 = vst [vmem:[#allocation9 + $0x11] sm:$0x1] %v1017_v7 }
 0x265   :  { %2222 = vst.sshfl [vmem:[#allocation9 + $0x29] sm:$0x1 pattern:$0x73625140] %v988_v10  ;;  %1296 = vmatprep.mubr.bf16.mxu1 %v3309_v9  ;;  %1226 = vmatpush1.bf16.msra.mxu0 %v2685_v40 }
 0x266   :  { %1267 = vmatpush1.bf16.msra.mxu1 %v2689_v41  ;;  %v1020_v23 = vcombine.high %v1016_v11, %v1016_v11  ;;  %1032 = vst [vmem:[#allocation9 + $0x19] sm:$0x1] %v1019_v32  ;;  %1035 = vst [vmem:[#allocation9 + $0x31] sm:$0x1] %v1018_v20  ;;  %1227 = vmatprep.subr.bf16.mxu0 %v2693_v42 }
 0x267   :  { %1268 = vmatprep.subr.bf16.mxu1 %v2695_v43 }
 0x268   :  { %1036 = vst [vmem:[#allocation9 + $0x39] sm:$0x1] %v1020_v23 }
 0x269   :  { %1228 = vmatpush1.bf16.msra.mxu0 %v2699_v45 }
 0x26a   :  { %1269 = vmatpush1.bf16.msra.mxu1 %v2701_v46  ;;  %1229 = vmatprep.subr.bf16.mxu0 %v2705_v47 }
 0x26b   :  { %1270 = vmatprep.subr.bf16.mxu1 %v2709_v48 }
 0x26d   :  { %1230 = vmatpush1.bf16.msra.mxu0 %v2711_v49 }
 0x26e   :  { %1271 = vmatpush1.bf16.msra.mxu1 %v2713_v50  ;;  %1231 = vmatprep.subr.bf16.mxu0 %v2717_v51 }
 0x26f   :  { %1272 = vmatprep.subr.bf16.mxu1 %v2721_v52 }
 0x271   :  { %1232 = vmatpush1.bf16.msra.mxu0 %v2727_v54 }
 0x272   :  { %1273 = vmatpush1.bf16.msra.mxu1 %v2729_v55  ;;  %1233 = vmatprep.subr.bf16.mxu0 %v2733_v56 }
 0x273   :  { %1274 = vmatprep.subr.bf16.mxu1 %v2735_v57 }
 0x275   :  { %1234 = vmatpush1.bf16.msra.mxu0 %v2739_v58 }
 0x276   :  { %1275 = vmatpush1.bf16.msra.mxu1 %v2741_v59  ;;  %1235 = vmatprep.subr.bf16.mxu0 %v2745_v60 }
 0x277   :  { %1276 = vmatprep.subr.bf16.mxu1 %v2747_v61 }
 0x279   :  { %1236 = vmatpush1.bf16.msra.mxu0 %v2753_v63 }
 0x27a   :  { %1277 = vmatpush1.bf16.msra.mxu1 %v2755_v1  ;;  %1237 = vmatprep.subr.bf16.mxu0 %v2759_v2 }
 0x27b   :  { %1278 = vmatprep.subr.bf16.mxu1 %v2761_v3 }
 0x27d   :  { %1238 = vmatpush1.bf16.msra.mxu0 %v2765_v4 }
 0x27e   :  { %1279 = vmatpush1.bf16.msra.mxu1 %v2767_v5  ;;  %1404 = vmatprep.subr.bf16.mxu0 %v2671_v33 }
 0x27f   :  { %1445 = vmatprep.subr.bf16.mxu1 %v2673_v34  ;;  %v3311_v34 = vld [vmem:[#allocation14_spill] sm:$0xff] }
 0x320   :  { %v1076_v62 = vpop.f32.mrf.mxu0 }
 0x321   :  { %v1117_v27 = vpop.f32.mrf.mxu1  ;;  %v1124_v29 = vadd.f32 %v1076_v62, %v2844_v31 }
 0x322   :  { %v1078_v25 = vpop.f32.mrf.mxu0  ;;  %v1126_v33 = vadd.f32 %v1117_v27, %v3310_v18 }
 0x323   :  { %v1119_v13 = vpop.f32.mrf.mxu1  ;;  %v2223_v14 = vmul.f32 -1.442695, %v1124_v29  ;;  %v1125_v19 = vadd.f32 %v1078_v25, %v2849_v53 }
 0x324   :  { %v1080_v0 = vpop.f32.mrf.mxu0  ;;  %v2225_v26 = vmul.f32 -1.442695, %v1126_v33  ;;  %v1127_v30 = vadd.f32 %v1119_v13, %v3311_v34 }
 0x325   :  { %v1121_v28 = vpop.f32.mrf.mxu1  ;;  %2409 = vpow2.f32 %v2223_v14  ;;  %v2224_v17 = vmul.f32 -1.442695, %v1125_v19 }
 0x326   :  { %v1081_v15 = vpop.f32.mrf.mxu0 }
 0x327   :  { %v1122_v12 = vpop.f32.mrf.mxu1  ;;  %2411 = vpow2.f32 %v2224_v17 }
 0x328   :  { %2413 = vpow2.f32 %v2225_v26 }
 0x329   :  { %2415 = vtanh.f32 %v1127_v30 }
 0x332   :  { %v2410_v16 = vpop.eup %2409 }
 0x333   :  { %v1137_v22 = vadd.f32 1.0, %v2410_v16 }
 0x334   :  { %v2412_v31 = vpop.eup %2411 }
 0x335   :  { %2417 = vrcp.f32 %v1137_v22  ;;  %v1138_v10 = vadd.f32 1.0, %v2412_v31  ;;  %v2414_v53 = vpop.eup %2413 }
 0x336   :  { %v2416_v6 = vpop.eup %2415  ;;  %v1139_v20 = vadd.f32 1.0, %v2414_v53 }
 0x337   :  { %2419 = vrcp.f32 %v1138_v10 }
 0x338   :  { %2421 = vrcp.f32 %v1139_v20 }
 0x342   :  { %v2418_v8 = vpop.eup %2417 }
 0x343   :  { %v1148_v7 = vmul.f32 %v2418_v8, %v2416_v6 }
 0x344   :  { %v2420_v11 = vpop.eup %2419 }
 0x345   :  { %v1147_v32 = vmul.f32 %v2420_v11, %v2961_v24  ;;  %v2422_v62 = vpop.eup %2421 }
 0x347   :  { %v3009_v23 = vadd.f32 %v1148_v7, %v1147_v32 }
 0x349   :  { %2423 = vtanh.f32 %v3009_v23 }
 0x356   :  { %v2424_v27 = vpop.eup %2423 }
 0x357   :  { %v1151_v29 = vmul.f32 %v2424_v27, %v2422_v62 }
 0x359   :  { %v1153_v25 = vcombine.high %v1151_v29, %v1151_v29  ;;  %v1160_v13 = vrot.slane %v1151_v29, %v2914_v21  ;;  %v1222_v14 = vpack.c.bf16 %v1151_v29, %v1151_v29 }
 0x35b   :  { %v1167_v19 = vrot.slane %v1153_v25, %v2914_v21  ;;  %v1168_v0 = vcombine.high %v1160_v13, %v1160_v13  ;;  %v1176_v28 = vrot.slane %v1160_v13, %v2914_v21  ;;  %2226 = vst.sshfl [vmem:[#allocation9 + $0x2] sm:$0x1 pattern:$0x73625140] %v1160_v13  ;;  %1256 = vmatmul.mubr.bf16.vlgmr.msra.gmra.mxu0 %v1222_v14 }
 0x35c   :  { %1297 = vmatmul.mubr.bf16.vlgmr.msra.gmra.mxu1 %v1222_v14  ;;  %1405 = vmatpush1.bf16.msra.mxu0 %v2675_v36 }
 0x35d   :  { %1446 = vmatpush1.bf16.msra.mxu1 %v2677_v37  ;;  %v1169_v24 = vcombine.high %v1167_v19, %v1167_v19  ;;  %v1183_v17 = vrot.slane %v1167_v19, %v2914_v21  ;;  %v1190_v15 = vrot.slane %v1168_v0, %v2914_v21  ;;  %v1198_v12 = vcombine.high %v1176_v28, %v1176_v28 }
 0x35e   :  { %2227 = vst.sshfl [vmem:[#allocation9 + $0xa] sm:$0x1 pattern:$0x73625140] %v1168_v0  ;;  %1406 = vmatprep.subr.bf16.mxu0 %v2681_v38  ;;  %1447 = vmatprep.subr.bf16.mxu1 %v2683_v39  ;;  %v3050_v38 = vld [vmem:[#allocation8 + $0xe4] ss:$16 sps:$4 sm:$0xff]  }
 0x35f   :  { %2228 = vst.sshfl [vmem:[#allocation9 + $0x22] sm:$0x1 pattern:$0x73625140] %v1167_v19  ;;  %1436 = vmatprep.mubr.bf16.mxu0 %v3309_v9  ;;  %v1197_v18 = vrot.slane %v1169_v24, %v2914_v21  ;;  %v1199_v33 = vcombine.high %v1183_v17, %v1183_v17  ;;  %v1200_v36 = vcombine.high %v1190_v15, %v1190_v15  ;;  %1212 = vst [vmem:[#allocation9 + $0x12] sm:$0x1] %v1198_v12 }
 0x360   :  { %2229 = vst.sshfl [vmem:[#allocation9 + $0x2a] sm:$0x1 pattern:$0x73625140] %v1169_v24  ;;  %1477 = vmatprep.mubr.bf16.mxu1 %v3309_v9  ;;  %1407 = vmatpush1.bf16.msra.mxu0 %v2685_v40  ;;  %v3053_v39 = vld [vmem:[#allocation8 + $0xec] ss:$16 sps:$4 sm:$0xff]  }
 0x361   :  { %1448 = vmatpush1.bf16.msra.mxu1 %v2689_v41  ;;  %v1201_v37 = vcombine.high %v1197_v18, %v1197_v18  ;;  %1213 = vst [vmem:[#allocation9 + $0x1a] sm:$0x1] %v1200_v36  ;;  %1216 = vst [vmem:[#allocation9 + $0x32] sm:$0x1] %v1199_v33  ;;  %1408 = vmatprep.subr.bf16.mxu0 %v2693_v42  ;;  %v3312_v42 = vld [vmem:[#allocation15_spill] sm:$0xff] }
 0x362   :  { %1449 = vmatprep.subr.bf16.mxu1 %v2695_v43  ;;  %v3070_v19 = vld [vmem:[#allocation8 + $0xe8] ss:$16 sps:$4 sm:$0xff]   ;;  %v3075_v15 = vld [vmem:[#allocation8 + $0xc4] ss:$16 sps:$4 sm:$0xff]   ;;  %v3078_v12 = vld [vmem:[#allocation8 + $0xcc] ss:$16 sps:$4 sm:$0xff]  }
 0x363   :  { %1217 = vst [vmem:[#allocation9 + $0x3a] sm:$0x1] %v1201_v37  ;;  %v3084_v37 = vld [vmem:[#allocation8 + $0xc0] ss:$16 sps:$4 sm:$0xff]  }
 0x364   :  { %1409 = vmatpush1.bf16.msra.mxu0 %v2699_v45 }
 0x365   :  { %1450 = vmatpush1.bf16.msra.mxu1 %v2701_v46  ;;  %1410 = vmatprep.subr.bf16.mxu0 %v2705_v47 }
 0x366   :  { %1451 = vmatprep.subr.bf16.mxu1 %v2709_v48  ;;  %v3313_v48 = vld [vmem:[#allocation17_spill] sm:$0xff] }
 0x368   :  { %1411 = vmatpush1.bf16.msra.mxu0 %v2711_v49 }
 0x369   :  { %1452 = vmatpush1.bf16.msra.mxu1 %v2713_v50  ;;  %1412 = vmatprep.subr.bf16.mxu0 %v2717_v51 }
 0x36a   :  { %1453 = vmatprep.subr.bf16.mxu1 %v2721_v52 }
 0x36c   :  { %1413 = vmatpush1.bf16.msra.mxu0 %v2727_v54 }
 0x36d   :  { %1454 = vmatpush1.bf16.msra.mxu1 %v2729_v55  ;;  %1414 = vmatprep.subr.bf16.mxu0 %v2733_v56  ;;  %v3314_v56 = vld [vmem:[#allocation16_spill] sm:$0xff] }
 0x36e   :  { %1455 = vmatprep.subr.bf16.mxu1 %v2735_v57 }
 0x370   :  { %1415 = vmatpush1.bf16.msra.mxu0 %v2739_v58 }
 0x371   :  { %1456 = vmatpush1.bf16.msra.mxu1 %v2741_v59  ;;  %1416 = vmatprep.subr.bf16.mxu0 %v2745_v60  ;;  %v3315_v59 = vld [vmem:[#allocation18_spill] sm:$0xff] }
 0x372   :  { %1457 = vmatprep.subr.bf16.mxu1 %v2747_v61 }
 0x374   :  { %1417 = vmatpush1.bf16.msra.mxu0 %v2753_v63 }
 0x375   :  { %1458 = vmatpush1.bf16.msra.mxu1 %v2755_v1  ;;  %1418 = vmatprep.subr.bf16.mxu0 %v2759_v2 }
 0x376   :  { %1459 = vmatprep.subr.bf16.mxu1 %v2761_v3 }
 0x378   :  { %1419 = vmatpush1.bf16.msra.mxu0 %v2765_v4 }
 0x379   :  { %1460 = vmatpush1.bf16.msra.mxu1 %v2767_v5  ;;  %1585 = vmatprep.subr.bf16.mxu0 %v3050_v38 }
 0x37a   :  { %1626 = vmatprep.subr.bf16.mxu1 %v3053_v39 }
 0x41b   :  { %v1257_v40 = vpop.f32.mrf.mxu0 }
 0x41c   :  { %v1298_v41 = vpop.f32.mrf.mxu1  ;;  %v1305_v43 = vadd.f32 %v1257_v40, %v3312_v42  ;;  %v3087_v40 = vld [vmem:[#allocation8 + $0xc8] ss:$16 sps:$4 sm:$0xff]   ;;  %v3090_v42 = vld [vmem:[#allocation8 + $0xa4] ss:$16 sps:$4 sm:$0xff]  }
 0x41d   :  { %v1259_v45 = vpop.f32.mrf.mxu0  ;;  %v1307_v57 = vadd.f32 %v1298_v41, %v3314_v56  ;;  %v3126_v56 = vld [vmem:[#allocation8 + $0x44] ss:$16 sps:$4 sm:$0xff]  }
 0x41e   :  { %v1300_v46 = vpop.f32.mrf.mxu1  ;;  %v2230_v47 = vmul.f32 -1.442695, %v1305_v43  ;;  %v1306_v49 = vadd.f32 %v1259_v45, %v3313_v48  ;;  %v3093_v43 = vld [vmem:[#allocation8 + $0xac] ss:$16 sps:$4 sm:$0xff]   ;;  %v3096_v45 = vld [vmem:[#allocation8 + $0xa0] ss:$16 sps:$4 sm:$0xff]  }
 0x41f   :  { %v1261_v50 = vpop.f32.mrf.mxu0  ;;  %v2232_v58 = vmul.f32 -1.442695, %v1307_v57  ;;  %v1308_v60 = vadd.f32 %v1300_v46, %v3315_v59  ;;  %v3099_v46 = vld [vmem:[#allocation8 + $0xa8] ss:$16 sps:$4 sm:$0xff]   ;;  %v3105_v48 = vld [vmem:[#allocation8 + $0x8c] ss:$16 sps:$4 sm:$0xff]  }
 0x420   :  { %v1302_v51 = vpop.f32.mrf.mxu1  ;;  %2425 = vpow2.f32 %v2230_v47  ;;  %v2231_v52 = vmul.f32 -1.442695, %v1306_v49  ;;  %v3102_v47 = vld [vmem:[#allocation8 + $0x84] ss:$16 sps:$4 sm:$0xff]   ;;  %v3108_v49 = vld [vmem:[#allocation8 + $0x80] ss:$16 sps:$4 sm:$0xff]  }
 0x421   :  { %v1262_v54 = vpop.f32.mrf.mxu0  ;;  %v3111_v50 = vld [vmem:[#allocation8 + $0x88] ss:$16 sps:$4 sm:$0xff]   ;;  %v3114_v51 = vld [vmem:[#allocation8 + $0x64] ss:$16 sps:$4 sm:$0xff]   ;;  %v3129_v57 = vld [vmem:[#allocation8 + $0x4c] ss:$16 sps:$4 sm:$0xff]  }
 0x422   :  { %v1303_v55 = vpop.f32.mrf.mxu1  ;;  %2427 = vpow2.f32 %v2231_v52  ;;  %v3117_v52 = vld [vmem:[#allocation8 + $0x6c] ss:$16 sps:$4 sm:$0xff]   ;;  %v3120_v54 = vld [vmem:[#allocation8 + $0x60] ss:$16 sps:$4 sm:$0xff]   ;;  %v3135_v59 = vld [vmem:[#allocation8 + $0x48] ss:$16 sps:$4 sm:$0xff]  }
 0x423   :  { %2429 = vpow2.f32 %v2232_v58  ;;  %v3123_v55 = vld [vmem:[#allocation8 + $0x68] ss:$16 sps:$4 sm:$0xff]   ;;  %v3132_v58 = vld [vmem:[#allocation8 + $0x40] ss:$16 sps:$4 sm:$0xff]  }
 0x424   :  { %2431 = vtanh.f32 %v1308_v60  ;;  %v3138_v60 = vld [vmem:[#allocation8 + $0x24] ss:$16 sps:$4 sm:$0xff]  }
 0x42d   :  { %v2426_v61 = vpop.eup %2425 }
 0x42e   :  { %v1318_v26 = vadd.f32 1.0, %v2426_v61  ;;  %v3141_v61 = vld [vmem:[#allocation8 + $0x2c] ss:$16 sps:$4 sm:$0xff]  }
 0x42f   :  { %v2428_v34 = vpop.eup %2427 }
 0x430   :  { %2433 = vrcp.f32 %v1318_v26  ;;  %v1319_v30 = vadd.f32 1.0, %v2428_v34  ;;  %v2430_v16 = vpop.eup %2429 }
 0x431   :  { %v2432_v22 = vpop.eup %2431  ;;  %v1320_v6 = vadd.f32 1.0, %v2430_v16 }
 0x432   :  { %2435 = vrcp.f32 %v1319_v30  ;;  %v3316_v30 = vld [vmem:[#allocation19_spill] sm:$0xff] }
 0x433   :  { %2437 = vrcp.f32 %v1320_v6 }
 0x43d   :  { %v2434_v31 = vpop.eup %2433 }
 0x43e   :  { %v1329_v10 = vmul.f32 %v2434_v31, %v2432_v22 }
 0x43f   :  { %v2436_v53 = vpop.eup %2435 }
 0x440   :  { %v1328_v8 = vmul.f32 %v2436_v53, %v3009_v23  ;;  %v2438_v11 = vpop.eup %2437  ;;  %v3067_v23 = vld [vmem:[#allocation8 + $0xe0] ss:$16 sps:$4 sm:$0xff]  }
 0x442   :  { %v3061_v7 = vadd.f32 %v1329_v10, %v1328_v8 }
 0x444   :  { %2439 = vtanh.f32 %v3061_v7 }
 0x451   :  { %v2440_v20 = vpop.eup %2439 }
 0x452   :  { %v1332_v32 = vmul.f32 %v2440_v20, %v2438_v11  ;;  %v3319_v20 = vld [vmem:[#allocation22_spill] sm:$0xff] }
 0x454   :  { %v1334_v62 = vcombine.high %v1332_v32, %v1332_v32  ;;  %v1341_v27 = vrot.slane %v1332_v32, %v2914_v21  ;;  %v1403_v29 = vpack.c.bf16 %v1332_v32, %v1332_v32 }
 0x456   :  { %v1348_v25 = vrot.slane %v1334_v62, %v2914_v21  ;;  %v1349_v13 = vcombine.high %v1341_v27, %v1341_v27  ;;  %v1357_v14 = vrot.slane %v1341_v27, %v2914_v21  ;;  %2233 = vst.sshfl [vmem:[#allocation9 + $0x3] sm:$0x1 pattern:$0x73625140] %v1341_v27  ;;  %1437 = vmatmul.mubr.bf16.vlgmr.msra.gmra.mxu0 %v1403_v29 }
 0x457   :  { %1478 = vmatmul.mubr.bf16.vlgmr.msra.gmra.mxu1 %v1403_v29  ;;  %1586 = vmatpush1.bf16.msra.mxu0 %v3067_v23 }
 0x458   :  { %1627 = vmatpush1.bf16.msra.mxu1 %v3070_v19  ;;  %v1350_v0 = vcombine.high %v1348_v25, %v1348_v25  ;;  %v1364_v28 = vrot.slane %v1348_v25, %v2914_v21  ;;  %v1371_v24 = vrot.slane %v1349_v13, %v2914_v21  ;;  %v1379_v17 = vcombine.high %v1357_v14, %v1357_v14 }
 0x459   :  { %2234 = vst.sshfl [vmem:[#allocation9 + $0xb] sm:$0x1 pattern:$0x73625140] %v1349_v13  ;;  %1587 = vmatprep.subr.bf16.mxu0 %v3075_v15  ;;  %1628 = vmatprep.subr.bf16.mxu1 %v3078_v12 }
 0x45a   :  { %2235 = vst.sshfl [vmem:[#allocation9 + $0x23] sm:$0x1 pattern:$0x73625140] %v1348_v25  ;;  %1617 = vmatprep.mubr.bf16.mxu0 %v3309_v9  ;;  %v1378_v18 = vrot.slane %v1350_v0, %v2914_v21  ;;  %v1380_v33 = vcombine.high %v1364_v28, %v1364_v28  ;;  %v1381_v36 = vcombine.high %v1371_v24, %v1371_v24  ;;  %1393 = vst [vmem:[#allocation9 + $0x13] sm:$0x1] %v1379_v17 }
 0x45b   :  { %2236 = vst.sshfl [vmem:[#allocation9 + $0x2b] sm:$0x1 pattern:$0x73625140] %v1350_v0  ;;  %1658 = vmatprep.mubr.bf16.mxu1 %v3309_v9  ;;  %1588 = vmatpush1.bf16.msra.mxu0 %v3084_v37 }
 0x45c   :  { %1629 = vmatpush1.bf16.msra.mxu1 %v3087_v40  ;;  %v1382_v41 = vcombine.high %v1378_v18, %v1378_v18  ;;  %1394 = vst [vmem:[#allocation9 + $0x1b] sm:$0x1] %v1381_v36  ;;  %1397 = vst [vmem:[#allocation9 + $0x33] sm:$0x1] %v1380_v33  ;;  %1589 = vmatprep.subr.bf16.mxu0 %v3090_v42 }
 0x45d   :  { %1630 = vmatprep.subr.bf16.mxu1 %v3093_v43 }
 0x45e   :  { %1398 = vst [vmem:[#allocation9 + $0x3b] sm:$0x1] %v1382_v41 }
 0x45f   :  { %1590 = vmatpush1.bf16.msra.mxu0 %v3096_v45 }
 0x460   :  { %1631 = vmatpush1.bf16.msra.mxu1 %v3099_v46  ;;  %1591 = vmatprep.subr.bf16.mxu0 %v3102_v47 }
 0x461   :  { %1632 = vmatprep.subr.bf16.mxu1 %v3105_v48 }
 0x463   :  { %1592 = vmatpush1.bf16.msra.mxu0 %v3108_v49 }
 0x464   :  { %1633 = vmatpush1.bf16.msra.mxu1 %v3111_v50  ;;  %1593 = vmatprep.subr.bf16.mxu0 %v3114_v51 }
 0x465   :  { %1634 = vmatprep.subr.bf16.mxu1 %v3117_v52 }
 0x467   :  { %1594 = vmatpush1.bf16.msra.mxu0 %v3120_v54 }
 0x468   :  { %1635 = vmatpush1.bf16.msra.mxu1 %v3123_v55  ;;  %1595 = vmatprep.subr.bf16.mxu0 %v3126_v56 }
 0x469   :  { %1636 = vmatprep.subr.bf16.mxu1 %v3129_v57 }
 0x46b   :  { %1596 = vmatpush1.bf16.msra.mxu0 %v3132_v58 }
 0x46c   :  { %1637 = vmatpush1.bf16.msra.mxu1 %v3135_v59  ;;  %1597 = vmatprep.subr.bf16.mxu0 %v3138_v60 }
 0x46d   :  { %1638 = vmatprep.subr.bf16.mxu1 %v3141_v61 }
 0x46f   :  { %1598 = vmatpush1.bf16.msra.mxu0 %v2753_v63 }
 0x470   :  { %1639 = vmatpush1.bf16.msra.mxu1 %v2755_v1  ;;  %1599 = vmatprep.subr.bf16.mxu0 %v2759_v2  ;;  %v3317_v1 = vld [vmem:[#allocation21_spill] sm:$0xff] }
 0x471   :  { %1640 = vmatprep.subr.bf16.mxu1 %v2761_v3 }
 0x473   :  { %1600 = vmatpush1.bf16.msra.mxu0 %v2765_v4 }
 0x474   :  { %1641 = vmatpush1.bf16.msra.mxu1 %v2767_v5  ;;  %1766 = vmatprep.subr.bf16.mxu0 %v3050_v38  ;;  %v3318_v5 = vld [vmem:[#allocation20_spill] sm:$0xff] }
 0x475   :  { %1807 = vmatprep.subr.bf16.mxu1 %v3053_v39 }
 0x516   :  { %v1438_v26 = vpop.f32.mrf.mxu0 }
 0x517   :  { %v1479_v34 = vpop.f32.mrf.mxu1  ;;  %v1486_v16 = vadd.f32 %v1438_v26, %v3316_v30 }
 0x518   :  { %v1440_v22 = vpop.f32.mrf.mxu0  ;;  %v1488_v8 = vadd.f32 %v1479_v34, %v3318_v5  ;;  %v3192_v5 = vld [vmem:[#allocation8 + $0x20] ss:$16 sps:$4 sm:$0xff]  }
 0x519   :  { %v1481_v63 = vpop.f32.mrf.mxu1  ;;  %v2237_v31 = vmul.f32 -1.442695, %v1486_v16  ;;  %v1487_v10 = vadd.f32 %v1440_v22, %v3317_v1 }
 0x51a   :  { %v1442_v2 = vpop.f32.mrf.mxu0  ;;  %v2239_v11 = vmul.f32 -1.442695, %v1488_v8  ;;  %v1489_v32 = vadd.f32 %v1481_v63, %v3319_v20  ;;  %v3195_v8 = vld [vmem:[#allocation8 + $0x28] ss:$16 sps:$4 sm:$0xff]   ;;  %v3201_v20 = vld [vmem:[#allocation8 + $0xc] ss:$16 sps:$4 sm:$0xff]  }
 0x51b   :  { %v1483_v53 = vpop.f32.mrf.mxu1  ;;  %2441 = vpow2.f32 %v2237_v31  ;;  %v2238_v3 = vmul.f32 -1.442695, %v1487_v10 }
 0x51c   :  { %v1443_v4 = vpop.f32.mrf.mxu0 }
 0x51d   :  { %v1484_v6 = vpop.f32.mrf.mxu1  ;;  %2443 = vpow2.f32 %v2238_v3 }
 0x51e   :  { %2445 = vpow2.f32 %v2239_v11  ;;  %v3198_v11 = vld [vmem:[#allocation8 + $0x4] ss:$16 sps:$4 sm:$0xff]  }
 0x51f   :  { %2447 = vtanh.f32 %v1489_v32  ;;  %v3204_v32 = vld [vmem:[#allocation8] ss:$16 sps:$4 sm:$0xff]  }
 0x528   :  { %v2442_v62 = vpop.eup %2441 }
 0x529   :  { %v1499_v27 = vadd.f32 1.0, %v2442_v62  ;;  %v3207_v62 = vld [vmem:[#allocation8 + $0x8] ss:$16 sps:$4 sm:$0xff]  }
 0x52a   :  { %v2444_v29 = vpop.eup %2443 }
 0x52b   :  { %2449 = vrcp.f32 %v1499_v27  ;;  %v1500_v25 = vadd.f32 1.0, %v2444_v29  ;;  %v2446_v13 = vpop.eup %2445 }
 0x52c   :  { %v2448_v14 = vpop.eup %2447  ;;  %v1501_v17 = vadd.f32 1.0, %v2446_v13 }
 0x52d   :  { %2451 = vrcp.f32 %v1500_v25  ;;  %v3320_v25 = vld [vmem:[#allocation23_spill] sm:$0xff] }
 0x52e   :  { %2453 = vrcp.f32 %v1501_v17 }
 0x538   :  { %v2450_v0 = vpop.eup %2449 }
 0x539   :  { %v1510_v28 = vmul.f32 %v2450_v0, %v2448_v14 }
 0x53a   :  { %v2452_v24 = vpop.eup %2451 }
 0x53b   :  { %v1509_v18 = vmul.f32 %v2452_v24, %v3061_v7  ;;  %v2454_v36 = vpop.eup %2453  ;;  %v3321_v24 = vld [vmem:[#allocation25_spill] sm:$0xff] }
 0x53d   :  { %v3157_v33 = vadd.f32 %v1510_v28, %v1509_v18 }
 0x53f   :  { %2455 = vtanh.f32 %v3157_v33 }
 0x54c   :  { %v2456_v41 = vpop.eup %2455 }
 0x54d   :  { %v1513_v26 = vmul.f32 %v2456_v41, %v2454_v36 }
 0x54f   :  { %v1515_v34 = vcombine.high %v1513_v26, %v1513_v26  ;;  %v1522_v30 = vrot.slane %v1513_v26, %v2914_v21  ;;  %v1584_v16 = vpack.c.bf16 %v1513_v26, %v1513_v26 }
 0x551   :  { %v1529_v22 = vrot.slane %v1515_v34, %v2914_v21  ;;  %v1530_v63 = vcombine.high %v1522_v30, %v1522_v30  ;;  %v1538_v31 = vrot.slane %v1522_v30, %v2914_v21  ;;  %2240 = vst.sshfl [vmem:[#allocation9 + $0x4] sm:$0x1 pattern:$0x73625140] %v1522_v30  ;;  %1618 = vmatmul.mubr.bf16.vlgmr.msra.gmra.mxu0 %v1584_v16  ;;  %v3322_v30 = vld [vmem:[#allocation24_spill] sm:$0xff] }
 0x552   :  { %1659 = vmatmul.mubr.bf16.vlgmr.msra.gmra.mxu1 %v1584_v16  ;;  %1767 = vmatpush1.bf16.msra.mxu0 %v3067_v23 }
 0x553   :  { %1808 = vmatpush1.bf16.msra.mxu1 %v3070_v19  ;;  %v1531_v7 = vcombine.high %v1529_v22, %v1529_v22  ;;  %v1545_v1 = vrot.slane %v1529_v22, %v2914_v21  ;;  %v1552_v10 = vrot.slane %v1530_v63, %v2914_v21  ;;  %v1560_v2 = vcombine.high %v1538_v31, %v1538_v31 }
 0x554   :  { %2241 = vst.sshfl [vmem:[#allocation9 + $0xc] sm:$0x1 pattern:$0x73625140] %v1530_v63  ;;  %1768 = vmatprep.subr.bf16.mxu0 %v3075_v15  ;;  %1809 = vmatprep.subr.bf16.mxu1 %v3078_v12 }
 0x555   :  { %2242 = vst.sshfl [vmem:[#allocation9 + $0x24] sm:$0x1 pattern:$0x73625140] %v1529_v22  ;;  %1798 = vmatprep.mubr.bf16.mxu0 %v3309_v9  ;;  %v1559_v53 = vrot.slane %v1531_v7, %v2914_v21  ;;  %v1561_v3 = vcombine.high %v1545_v1, %v1545_v1  ;;  %v1562_v4 = vcombine.high %v1552_v10, %v1552_v10  ;;  %1574 = vst [vmem:[#allocation9 + $0x14] sm:$0x1] %v1560_v2 }
 0x556   :  { %2243 = vst.sshfl [vmem:[#allocation9 + $0x2c] sm:$0x1 pattern:$0x73625140] %v1531_v7  ;;  %1839 = vmatprep.mubr.bf16.mxu1 %v3309_v9  ;;  %1769 = vmatpush1.bf16.msra.mxu0 %v3084_v37 }
 0x557   :  { %1810 = vmatpush1.bf16.msra.mxu1 %v3087_v40  ;;  %v1563_v6 = vcombine.high %v1559_v53, %v1559_v53  ;;  %1575 = vst [vmem:[#allocation9 + $0x1c] sm:$0x1] %v1562_v4  ;;  %1578 = vst [vmem:[#allocation9 + $0x34] sm:$0x1] %v1561_v3  ;;  %1770 = vmatprep.subr.bf16.mxu0 %v3090_v42 }
 0x558   :  { %1811 = vmatprep.subr.bf16.mxu1 %v3093_v43 }
 0x559   :  { %1579 = vst [vmem:[#allocation9 + $0x3c] sm:$0x1] %v1563_v6 }
 0x55a   :  { %1771 = vmatpush1.bf16.msra.mxu0 %v3096_v45 }
 0x55b   :  { %1812 = vmatpush1.bf16.msra.mxu1 %v3099_v46  ;;  %1772 = vmatprep.subr.bf16.mxu0 %v3102_v47 }
 0x55c   :  { %1813 = vmatprep.subr.bf16.mxu1 %v3105_v48 }
 0x55e   :  { %1773 = vmatpush1.bf16.msra.mxu0 %v3108_v49 }
 0x55f   :  { %1814 = vmatpush1.bf16.msra.mxu1 %v3111_v50  ;;  %1774 = vmatprep.subr.bf16.mxu0 %v3114_v51 }
 0x560   :  { %1815 = vmatprep.subr.bf16.mxu1 %v3117_v52 }
 0x562   :  { %1775 = vmatpush1.bf16.msra.mxu0 %v3120_v54 }
 0x563   :  { %1816 = vmatpush1.bf16.msra.mxu1 %v3123_v55  ;;  %1776 = vmatprep.subr.bf16.mxu0 %v3126_v56 }
 0x564   :  { %1817 = vmatprep.subr.bf16.mxu1 %v3129_v57 }
 0x566   :  { %1777 = vmatpush1.bf16.msra.mxu0 %v3132_v58 }
 0x567   :  { %1818 = vmatpush1.bf16.msra.mxu1 %v3135_v59  ;;  %1778 = vmatprep.subr.bf16.mxu0 %v3138_v60 }
 0x568   :  { %1819 = vmatprep.subr.bf16.mxu1 %v3141_v61 }
 0x56a   :  { %1779 = vmatpush1.bf16.msra.mxu0 %v3192_v5 }
 0x56b   :  { %1820 = vmatpush1.bf16.msra.mxu1 %v3195_v8  ;;  %1780 = vmatprep.subr.bf16.mxu0 %v3198_v11 }
 0x56c   :  { %1821 = vmatprep.subr.bf16.mxu1 %v3201_v20 }
 0x56e   :  { %1781 = vmatpush1.bf16.msra.mxu0 %v3204_v32 }
 0x56f   :  { %1822 = vmatpush1.bf16.msra.mxu1 %v3207_v62  ;;  %1947 = vmatprep.subr.bf16.mxu0 %v3050_v38 }
 0x570   :  { %1988 = vmatprep.subr.bf16.mxu1 %v3053_v39  ;;  %v3323_v39 = vld [vmem:[#allocation26_spill] sm:$0xff] }
 0x611   :  { %v1619_v27 = vpop.f32.mrf.mxu0 }
 0x612   :  { %v1660_v29 = vpop.f32.mrf.mxu1  ;;  %v1667_v13 = vadd.f32 %v1619_v27, %v3320_v25 }
 0x613   :  { %v1621_v14 = vpop.f32.mrf.mxu0  ;;  %v1669_v38 = vadd.f32 %v1660_v29, %v3322_v30 }
 0x614   :  { %v1662_v0 = vpop.f32.mrf.mxu1  ;;  %v2244_v28 = vmul.f32 -1.442695, %v1667_v13  ;;  %v1668_v17 = vadd.f32 %v1621_v14, %v3321_v24 }
 0x615   :  { %v1623_v18 = vpop.f32.mrf.mxu0  ;;  %v2246_v16 = vmul.f32 -1.442695, %v1669_v38  ;;  %v1670_v22 = vadd.f32 %v1662_v0, %v3323_v39 }
 0x616   :  { %v1664_v36 = vpop.f32.mrf.mxu1  ;;  %2457 = vpow2.f32 %v2244_v28  ;;  %v2245_v41 = vmul.f32 -1.442695, %v1668_v17 }
 0x617   :  { %v1624_v26 = vpop.f32.mrf.mxu0 }
 0x618   :  { %v1665_v34 = vpop.f32.mrf.mxu1  ;;  %2459 = vpow2.f32 %v2245_v41 }
 0x619   :  { %2461 = vpow2.f32 %v2246_v16 }
 0x61a   :  { %2463 = vtanh.f32 %v1670_v22 }
 0x623   :  { %v2458_v63 = vpop.eup %2457 }
 0x624   :  { %v1680_v31 = vadd.f32 1.0, %v2458_v63 }
 0x625   :  { %v2460_v7 = vpop.eup %2459 }
 0x626   :  { %2465 = vrcp.f32 %v1680_v31  ;;  %v1681_v1 = vadd.f32 1.0, %v2460_v7  ;;  %v2462_v10 = vpop.eup %2461 }
 0x627   :  { %v2464_v2 = vpop.eup %2463  ;;  %v1682_v6 = vadd.f32 1.0, %v2462_v10 }
 0x628   :  { %2467 = vrcp.f32 %v1681_v1 }
 0x629   :  { %2469 = vrcp.f32 %v1682_v6 }
 0x633   :  { %v2466_v53 = vpop.eup %2465 }
 0x634   :  { %v1691_v3 = vmul.f32 %v2466_v53, %v2464_v2 }
 0x635   :  { %v2468_v4 = vpop.eup %2467 }
 0x636   :  { %v1690_v27 = vmul.f32 %v2468_v4, %v3157_v33  ;;  %v2470_v25 = vpop.eup %2469 }
 0x638   :  { %v3217_v29 = vadd.f32 %v1691_v3, %v1690_v27 }
 0x63a   :  { %2471 = vtanh.f32 %v3217_v29 }
 0x647   :  { %v2472_v13 = vpop.eup %2471 }
 0x648   :  { %v1694_v14 = vmul.f32 %v2472_v13, %v2470_v25 }
 0x64a   :  { %v1696_v0 = vcombine.high %v1694_v14, %v1694_v14  ;;  %v1703_v28 = vrot.slane %v1694_v14, %v2914_v21  ;;  %v1765_v24 = vpack.c.bf16 %v1694_v14, %v1694_v14 }
 0x64c   :  { %v1710_v17 = vrot.slane %v1696_v0, %v2914_v21  ;;  %v1711_v18 = vcombine.high %v1703_v28, %v1703_v28  ;;  %v1719_v36 = vrot.slane %v1703_v28, %v2914_v21  ;;  %2247 = vst.sshfl [vmem:[#allocation9 + $0x5] sm:$0x1 pattern:$0x73625140] %v1703_v28  ;;  %1799 = vmatmul.mubr.bf16.vlgmr.msra.gmra.mxu0 %v1765_v24 }
 0x64d   :  { %1840 = vmatmul.mubr.bf16.vlgmr.msra.gmra.mxu1 %v1765_v24  ;;  %1948 = vmatpush1.bf16.msra.mxu0 %v3067_v23 }
 0x64e   :  { %1989 = vmatpush1.bf16.msra.mxu1 %v3070_v19  ;;  %v1712_v33 = vcombine.high %v1710_v17, %v1710_v17  ;;  %v1726_v41 = vrot.slane %v1710_v17, %v2914_v21  ;;  %v1733_v26 = vrot.slane %v1711_v18, %v2914_v21  ;;  %v1741_v34 = vcombine.high %v1719_v36, %v1719_v36 }
 0x64f   :  { %2248 = vst.sshfl [vmem:[#allocation9 + $0xd] sm:$0x1 pattern:$0x73625140] %v1711_v18  ;;  %1949 = vmatprep.subr.bf16.mxu0 %v3075_v15  ;;  %1990 = vmatprep.subr.bf16.mxu1 %v3078_v12  ;;  %v3324_v12 = vld [vmem:[#allocation27_spill] sm:$0xff] }
 0x650   :  { %2249 = vst.sshfl [vmem:[#allocation9 + $0x25] sm:$0x1 pattern:$0x73625140] %v1710_v17  ;;  %1979 = vmatprep.mubr.bf16.mxu0 %v3309_v9  ;;  %v1740_v30 = vrot.slane %v1712_v33, %v2914_v21  ;;  %v1742_v38 = vcombine.high %v1726_v41, %v1726_v41  ;;  %v1743_v23 = vcombine.high %v1733_v26, %v1733_v26  ;;  %1755 = vst [vmem:[#allocation9 + $0x15] sm:$0x1] %v1741_v34 }
 0x651   :  { %2250 = vst.sshfl [vmem:[#allocation9 + $0x2d] sm:$0x1 pattern:$0x73625140] %v1712_v33  ;;  %2020 = vmatprep.mubr.bf16.mxu1 %v3309_v9  ;;  %1950 = vmatpush1.bf16.msra.mxu0 %v3084_v37  ;;  %v3328_v17 = vld [vmem:[#allocation31_spill] sm:$0xff] }
 0x652   :  { %1991 = vmatpush1.bf16.msra.mxu1 %v3087_v40  ;;  %v1744_v19 = vcombine.high %v1740_v30, %v1740_v30  ;;  %1756 = vst [vmem:[#allocation9 + $0x1d] sm:$0x1] %v1743_v23  ;;  %1759 = vst [vmem:[#allocation9 + $0x35] sm:$0x1] %v1742_v38  ;;  %1951 = vmatprep.subr.bf16.mxu0 %v3090_v42 }
 0x653   :  { %1992 = vmatprep.subr.bf16.mxu1 %v3093_v43 }
 0x654   :  { %1760 = vst [vmem:[#allocation9 + $0x3d] sm:$0x1] %v1744_v19 }
 0x655   :  { %1952 = vmatpush1.bf16.msra.mxu0 %v3096_v45  ;;  %v3325_v45 = vld [vmem:[#allocation29_spill] sm:$0xff] }
 0x656   :  { %1993 = vmatpush1.bf16.msra.mxu1 %v3099_v46  ;;  %1953 = vmatprep.subr.bf16.mxu0 %v3102_v47 }
 0x657   :  { %1994 = vmatprep.subr.bf16.mxu1 %v3105_v48 }
 0x659   :  { %1954 = vmatpush1.bf16.msra.mxu0 %v3108_v49 }
 0x65a   :  { %1995 = vmatpush1.bf16.msra.mxu1 %v3111_v50  ;;  %1955 = vmatprep.subr.bf16.mxu0 %v3114_v51 }
 0x65b   :  { %1996 = vmatprep.subr.bf16.mxu1 %v3117_v52  ;;  %v3326_v52 = vld [vmem:[#allocation28_spill] sm:$0xff] }
 0x65d   :  { %1956 = vmatpush1.bf16.msra.mxu0 %v3120_v54 }
 0x65e   :  { %1997 = vmatpush1.bf16.msra.mxu1 %v3123_v55  ;;  %1957 = vmatprep.subr.bf16.mxu0 %v3126_v56  ;;  %v3327_v56 = vld [vmem:[#allocation30_spill] sm:$0xff] }
 0x65f   :  { %1998 = vmatprep.subr.bf16.mxu1 %v3129_v57 }
 0x661   :  { %1958 = vmatpush1.bf16.msra.mxu0 %v3132_v58 }
 0x662   :  { %1999 = vmatpush1.bf16.msra.mxu1 %v3135_v59  ;;  %1959 = vmatprep.subr.bf16.mxu0 %v3138_v60 }
 0x663   :  { %2000 = vmatprep.subr.bf16.mxu1 %v3141_v61 }
 0x665   :  { %1960 = vmatpush1.bf16.msra.mxu0 %v3192_v5 }
 0x666   :  { %2001 = vmatpush1.bf16.msra.mxu1 %v3195_v8  ;;  %1961 = vmatprep.subr.bf16.mxu0 %v3198_v11 }
 0x667   :  { %2002 = vmatprep.subr.bf16.mxu1 %v3201_v20 }
 0x669   :  { %1962 = vmatpush1.bf16.msra.mxu0 %v3204_v32 }
 0x66a   :  { %2003 = vmatpush1.bf16.msra.mxu1 %v3207_v62 }
 0x70c   :  { %v1800_v9 = vpop.f32.mrf.mxu0 }
 0x70d   :  { %v1841_v15 = vpop.f32.mrf.mxu1  ;;  %v1848_v37 = vadd.f32 %v1800_v9, %v3324_v12  ;;  %v3329_v9 = vld [vmem:[#allocation32_spill] sm:$0xff] }
 0x70e   :  { %v1802_v40 = vpop.f32.mrf.mxu0  ;;  %v1850_v54 = vadd.f32 %v1841_v15, %v3326_v52 }
 0x70f   :  { %v1843_v42 = vpop.f32.mrf.mxu1  ;;  %v2251_v43 = vmul.f32 -1.442695, %v1848_v37  ;;  %v1849_v46 = vadd.f32 %v1802_v40, %v3325_v45 }
 0x710   :  { %v1804_v47 = vpop.f32.mrf.mxu0  ;;  %v2253_v55 = vmul.f32 -1.442695, %v1850_v54  ;;  %v1851_v57 = vadd.f32 %v1843_v42, %v3327_v56 }
 0x711   :  { %v1845_v48 = vpop.f32.mrf.mxu1  ;;  %2473 = vpow2.f32 %v2251_v43  ;;  %v2252_v49 = vmul.f32 -1.442695, %v1849_v46 }
 0x712   :  { %v1805_v50 = vpop.f32.mrf.mxu0 }
 0x713   :  { %v1846_v51 = vpop.f32.mrf.mxu1  ;;  %2475 = vpow2.f32 %v2252_v49 }
 0x714   :  { %2477 = vpow2.f32 %v2253_v55 }
 0x715   :  { %2479 = vtanh.f32 %v1851_v57 }
 0x71e   :  { %v2474_v58 = vpop.eup %2473 }
 0x71f   :  { %v1861_v59 = vadd.f32 1.0, %v2474_v58 }
 0x720   :  { %v2476_v60 = vpop.eup %2475 }
 0x721   :  { %2481 = vrcp.f32 %v1861_v59  ;;  %v1862_v61 = vadd.f32 1.0, %v2476_v60  ;;  %v2478_v5 = vpop.eup %2477 }
 0x722   :  { %v2480_v8 = vpop.eup %2479  ;;  %v1863_v62 = vadd.f32 1.0, %v2478_v5 }
 0x723   :  { %2483 = vrcp.f32 %v1862_v61 }
 0x724   :  { %2485 = vrcp.f32 %v1863_v62 }
 0x72e   :  { %v2482_v11 = vpop.eup %2481 }
 0x72f   :  { %v1872_v20 = vmul.f32 %v2482_v11, %v2480_v8 }
 0x730   :  { %v2484_v32 = vpop.eup %2483 }
 0x731   :  { %v1871_v16 = vmul.f32 %v2484_v32, %v3217_v29  ;;  %v2486_v22 = vpop.eup %2485 }
 0x733   :  { %v1873_v39 = vadd.f32 %v1872_v20, %v1871_v16 }
 0x735   :  { %2487 = vtanh.f32 %v1873_v39 }
 0x742   :  { %v2488_v63 = vpop.eup %2487 }
 0x743   :  { %v1875_v31 = vmul.f32 %v2488_v63, %v2486_v22 }
 0x745   :  { %v1877_v7 = vcombine.high %v1875_v31, %v1875_v31  ;;  %v1884_v1 = vrot.slane %v1875_v31, %v2914_v21  ;;  %v1946_v10 = vpack.c.bf16 %v1875_v31, %v1875_v31 }
 0x747   :  { %v1891_v2 = vrot.slane %v1877_v7, %v2914_v21  ;;  %v1892_v53 = vcombine.high %v1884_v1, %v1884_v1  ;;  %v1900_v3 = vrot.slane %v1884_v1, %v2914_v21  ;;  %2254 = vst.sshfl [vmem:[#allocation9 + $0x6] sm:$0x1 pattern:$0x73625140] %v1884_v1  ;;  %1980 = vmatmul.mubr.bf16.vlgmr.msra.gmra.mxu0 %v1946_v10 }
 0x748   :  { %2021 = vmatmul.mubr.bf16.vlgmr.msra.gmra.mxu1 %v1946_v10 }
 0x749   :  { %v1893_v4 = vcombine.high %v1891_v2, %v1891_v2  ;;  %v1907_v6 = vrot.slane %v1891_v2, %v2914_v21  ;;  %v1914_v27 = vrot.slane %v1892_v53, %v2914_v21  ;;  %v1922_v29 = vcombine.high %v1900_v3, %v1900_v3  ;;  %2255 = vst.sshfl [vmem:[#allocation9 + $0xe] sm:$0x1 pattern:$0x73625140] %v1892_v53 }
 0x74a   :  { %2256 = vst.sshfl [vmem:[#allocation9 + $0x26] sm:$0x1 pattern:$0x73625140] %v1891_v2 }
 0x74b   :  { %v1921_v25 = vrot.slane %v1893_v4, %v2914_v21  ;;  %v1923_v13 = vcombine.high %v1907_v6, %v1907_v6  ;;  %v1924_v14 = vcombine.high %v1914_v27, %v1914_v27  ;;  %1936 = vst [vmem:[#allocation9 + $0x16] sm:$0x1] %v1922_v29  ;;  %2257 = vst.sshfl [vmem:[#allocation9 + $0x2e] sm:$0x1 pattern:$0x73625140] %v1893_v4 }
 0x74d   :  { %v1925_v0 = vcombine.high %v1921_v25, %v1921_v25  ;;  %1937 = vst [vmem:[#allocation9 + $0x1e] sm:$0x1] %v1924_v14  ;;  %1940 = vst [vmem:[#allocation9 + $0x36] sm:$0x1] %v1923_v13 }
 0x74f   :  { %1941 = vst [vmem:[#allocation9 + $0x3e] sm:$0x1] %v1925_v0 }
 0x807   :  { %v1981_v28 = vpop.f32.mrf.mxu0 }
 0x808   :  { %v2022_v24 = vpop.f32.mrf.mxu1  ;;  %v2029_v18 = vadd.f32 %v1981_v28, %v3328_v17 }
 0x809   :  { %v1983_v36 = vpop.f32.mrf.mxu0  ;;  %v2031_v15 = vadd.f32 %v2022_v24, %v3329_v9 }
 0x80a   :  { %v2024_v33 = vpop.f32.mrf.mxu1  ;;  %v2258_v41 = vmul.f32 -1.442695, %v2029_v18  ;;  %v2030_v26 = vadd.f32 %v1983_v36, %v2900_v35 }
 0x80b   :  { %v1985_v34 = vpop.f32.mrf.mxu0  ;;  %v2260_v12 = vmul.f32 -1.442695, %v2031_v15  ;;  %v2032_v37 = vadd.f32 %v2024_v33, %v2903_v44 }
 0x80c   :  { %v2026_v30 = vpop.f32.mrf.mxu1  ;;  %2489 = vpow2.f32 %v2258_v41  ;;  %v2259_v38 = vmul.f32 -1.442695, %v2030_v26 }
 0x80d   :  { %v1986_v23 = vpop.f32.mrf.mxu0 }
 0x80e   :  { %v2027_v19 = vpop.f32.mrf.mxu1  ;;  %2491 = vpow2.f32 %v2259_v38 }
 0x80f   :  { %2493 = vpow2.f32 %v2260_v12 }
 0x810   :  { %2495 = vtanh.f32 %v2032_v37 }
 0x819   :  { %v2490_v40 = vpop.eup %2489 }
 0x81a   :  { %v2042_v42 = vadd.f32 1.0, %v2490_v40 }
 0x81b   :  { %v2492_v43 = vpop.eup %2491 }
 0x81c   :  { %2497 = vrcp.f32 %v2042_v42  ;;  %v2043_v45 = vadd.f32 1.0, %v2492_v43  ;;  %v2494_v35 = vpop.eup %2493 }
 0x81d   :  { %v2496_v46 = vpop.eup %2495  ;;  %v2044_v50 = vadd.f32 1.0, %v2494_v35 }
 0x81e   :  { %2499 = vrcp.f32 %v2043_v45 }
 0x81f   :  { %2501 = vrcp.f32 %v2044_v50 }
 0x829   :  { %v2498_v47 = vpop.eup %2497 }
 0x82a   :  { %v2053_v48 = vmul.f32 %v2498_v47, %v2496_v46 }
 0x82b   :  { %v2500_v49 = vpop.eup %2499 }
 0x82c   :  { %v2052_v51 = vmul.f32 %v2500_v49, %v1873_v39  ;;  %v2502_v54 = vpop.eup %2501 }
 0x82e   :  { %v2054_v52 = vadd.f32 %v2053_v48, %v2052_v51 }
 0x830   :  { %2503 = vtanh.f32 %v2054_v52 }
 0x83d   :  { %v2504_v44 = vpop.eup %2503 }
 0x83e   :  { %v2056_v55 = vmul.f32 %v2504_v44, %v2502_v54 }
 0x840   :  { %v2058_v56 = vcombine.high %v2056_v55, %v2056_v55  ;;  %v2065_v57 = vrot.slane %v2056_v55, %v2914_v21 }
 0x842   :  { %v2072_v58 = vrot.slane %v2058_v56, %v2914_v21  ;;  %v2073_v59 = vcombine.high %v2065_v57, %v2065_v57  ;;  %v2081_v60 = vrot.slane %v2065_v57, %v2914_v21  ;;  %2261 = vst.sshfl [vmem:[#allocation9 + $0x7] sm:$0x1 pattern:$0x73625140] %v2065_v57 }
 0x844   :  { %v2074_v61 = vcombine.high %v2072_v58, %v2072_v58  ;;  %v2088_v5 = vrot.slane %v2072_v58, %v2914_v21  ;;  %v2095_v8 = vrot.slane %v2073_v59, %v2914_v21  ;;  %v2103_v11 = vcombine.high %v2081_v60, %v2081_v60  ;;  %2262 = vst.sshfl [vmem:[#allocation9 + $0xf] sm:$0x1 pattern:$0x73625140] %v2073_v59 }
 0x845   :  { %2263 = vst.sshfl [vmem:[#allocation9 + $0x27] sm:$0x1 pattern:$0x73625140] %v2072_v58 }
 0x846   :  { %v2102_v20 = vrot.slane %v2074_v61, %v2914_v21  ;;  %v2104_v32 = vcombine.high %v2088_v5, %v2088_v5  ;;  %v2105_v62 = vcombine.high %v2095_v8, %v2095_v8  ;;  %2117 = vst [vmem:[#allocation9 + $0x17] sm:$0x1] %v2103_v11  ;;  %2264 = vst.sshfl [vmem:[#allocation9 + $0x2f] sm:$0x1 pattern:$0x73625140] %v2074_v61 }
 0x848   :  { %v2106_v16 = vcombine.high %v2102_v20, %v2102_v20  ;;  %2118 = vst [vmem:[#allocation9 + $0x1f] sm:$0x1] %v2105_v62  ;;  %2121 = vst [vmem:[#allocation9 + $0x37] sm:$0x1] %v2104_v32 }
 0x84a   :  { %2122 = vst [vmem:[#allocation9 + $0x3f] sm:$0x1] %v2106_v16 }
 0x84b   :  { %2608 = shalt.err (!%p2605_p5)
}
 0x84c   :  { %s2633_s9 = smov 128   ;;  %s2634_s10 = smov 8  }
 0x84d   :  { %2134 = dma.vmem_to_hbm [thread:$0]  %s2129_s7, 1024, %s3286_s4, [#allocation5], %s2633_s9, %s2633_s9, %s2634_s10  }
 0x84e   :  { %2621 = dma.done.wait [#allocation5], 1024  }
 0x84f   :  { %2622 = vsyncadd [#allocation5], 4294966272 }
 0x850   :  { %2138 = vsyncpa [#allocation4], 1 }
 0x851   :  { %2139 = vsyncpa [#allocation7], 1 }
 0x852   :  { %2140 = vsyncpa [#allocation5], 1 }

</bundles_post_ra>
